<compile_context>
chip_gen: v5e
topology: v5e:2x2
jax: 0.10.0
libtpu: 0.0.40
codegen_flags: <defaults>
</compile_context>

<pallas_src>
import functools

import jax
import jax.numpy as jnp
from jax.experimental import pallas as pl
from jax.experimental.pallas import tpu as pltpu

# ----------------------------- config ---------------------------------------
BATCH = 2
SEQ = 8            # seqLen (<= tgtLen)
TGT_LEN = 16
ENC_DIM = 32       # encDim (d_model)
NUM_HEADS = 4
HDIM = ENC_DIM // NUM_HEADS    # d_k = d_v = 8
DFF = 64
NUM_LAYERS = 2
EPS = 1e-5

# --------------------- weight-slab row layout (per layer) --------------------
LANES = 128                        # slab width (lane-dense)
QKV_COLS = 3 * ENC_DIM             # 96 (= 3 * H * hd)
R_WQKV = 0                         # rows [  0,  32): Wqkv (D, 3*H*hd), Q pre-scaled
R_WO = R_WQKV + ENC_DIM            # rows [ 32,  64): Wo   (H*hd, D)
R_W1 = R_WO + ENC_DIM              # rows [ 64,  96): W1   (D, DFF)
R_W2 = R_W1 + ENC_DIM              # rows [ 96, 160): W2   (DFF, D)
R_BIAS = R_W2 + DFF                # rows [160, 168): bias / norm rows
R_TOTAL = R_BIAS + 8               # 168 (multiple of 8)
# bias-row order inside the 8-row block:
B_QKV, B_O, B_G1, B_B1N, B_FF1, B_FF2, B_G2, B_B2N = range(8)


# ------------------------- shared in-kernel helpers --------------------------
def _layernorm(x, gamma, beta):
    mean = jnp.mean(x, axis=-1, keepdims=True)
    var = jnp.mean((x - mean) ** 2, axis=-1, keepdims=True)
    return (x - mean) * jax.lax.rsqrt(var + EPS) * gamma + beta


# ------------------------------ fused kernel ---------------------------------
def encoder_kernel(x_ref, pos_ref, w_ref, o_ref, *,
                   num_layers, num_heads, d_head, batch, seq):
    f32 = jnp.float32
    H, hd, B, S = num_heads, d_head, batch, seq
    D = x_ref.shape[-1]

    out = x_ref[...] + pos_ref[...]            # (B*S, D); embDropout = identity

    for l in range(num_layers):                # static unroll (L = 2)
        x2d = out

        # ---- multi-head self-attention --------------------------------------
        # one dense QKV matmul: (B*S, D) @ (D, 3*H*hd); Q columns pre-scaled.
        wqkv = w_ref[l, R_WQKV:R_WQKV + D, 0:QKV_COLS]                 # (32, 96)
        bqkv = w_ref[l, R_BIAS + B_QKV:R_BIAS + B_QKV + 1, 0:QKV_COLS] # (1, 96)
        qkv = jnp.dot(x2d, wqkv, preferred_element_type=f32) + bqkv    # (B*S, 96)

        # split lanes into per-(head, batch) tiles -> (H*B, S, hd) batched dots
        def split_heads(goff):
            return jnp.stack(
                [qkv[b * S:(b + 1) * S, (goff + h) * hd:(goff + h + 1) * hd]
                 for h in range(H) for b in range(B)], axis=0)          # (H*B, S, hd)
        q = split_heads(0)            # already scaled by 1/sqrt(hd)
        k = split_heads(H)
        v = split_heads(2 * H)

        s = jax.lax.dot_general(q, k, (((2,), (2,)), ((0,), (0,))),
                                preferred_element_type=f32)             # (H*B, S, S)
        s = s - jnp.max(s, axis=-1, keepdims=True)
        p = jnp.exp(s)
        p = p * pl.reciprocal(jnp.sum(p, axis=-1, keepdims=True), approx=True)
        ctx = jax.lax.dot_general(p, v, (((2,), (1,)), ((0,), (0,))),
                                  preferred_element_type=f32)           # (H*B, S, hd)

        # output projection: per-head Wo contraction + cheap (VPU) sum over
        # heads -- avoids an (H*B,S,hd) -> (B*S,H*hd) lane relayout.
        ctx_h = ctx.reshape(H, B * S, hd)                               # leading-dim regroup
        wo = w_ref[l, R_WO:R_WO + H * hd, 0:D].reshape(H, hd, D)        # (H, hd, D)
        bo = w_ref[l, R_BIAS + B_O:R_BIAS + B_O + 1, 0:D]
        attn = jax.lax.dot_general(ctx_h, wo, (((2,), (1,)), ((0,), (0,))),
                                   preferred_element_type=f32)          # (H, B*S, D)
        attn = jnp.sum(attn, axis=0) + bo                               # (B*S, D)

        g1 = w_ref[l, R_BIAS + B_G1:R_BIAS + B_G1 + 1, 0:D]
        be1 = w_ref[l, R_BIAS + B_B1N:R_BIAS + B_B1N + 1, 0:D]
        out = _layernorm(x2d + attn, g1, be1)                           # norm1

        # ---- position-wise FFN (1x1 conv == linear) --------------------------
        x2d = out
        w1 = w_ref[l, R_W1:R_W1 + D, 0:DFF]
        b1 = w_ref[l, R_BIAS + B_FF1:R_BIAS + B_FF1 + 1, 0:DFF]
        w2 = w_ref[l, R_W2:R_W2 + DFF, 0:D]
        b2 = w_ref[l, R_BIAS + B_FF2:R_BIAS + B_FF2 + 1, 0:D]
        h1 = jnp.maximum(jnp.dot(x2d, w1, preferred_element_type=f32) + b1, 0.0)
        f = jnp.dot(h1, w2, preferred_element_type=f32) + b2
        g2 = w_ref[l, R_BIAS + B_G2:R_BIAS + B_G2 + 1, 0:D]
        be2 = w_ref[l, R_BIAS + B_B2N:R_BIAS + B_B2N + 1, 0:D]
        out = _layernorm(x2d + f, g2, be2)                              # norm2

    o_ref[...] = out.astype(o_ref.dtype)


# ------------------------------ wrapper ---------------------------------------
def encoder_forward(x, slab, pos_table):
    B, S, D = x.shape
    x2 = x.reshape(B * S, D)                       # metadata-only reshape
    pos2 = jnp.tile(pos_table[:S], (B, 1))         # (B*S, D), row b*S+s -> pos[s]
    kern = functools.partial(encoder_kernel, num_layers=NUM_LAYERS,
                             num_heads=NUM_HEADS, d_head=HDIM, batch=B, seq=S)
    out2 = pl.pallas_call(
        kern,
        out_shape=jax.ShapeDtypeStruct((B * S, D), x.dtype),
        grid=(1,),                                 # single fused step (batch folded)
        in_specs=[pl.BlockSpec((B * S, D), lambda i: (0, 0)),
                  pl.BlockSpec((B * S, D), lambda i: (0, 0)),
                  pl.BlockSpec(slab.shape, lambda i: (0, 0, 0))],
        out_specs=pl.BlockSpec((B * S, D), lambda i: (0, 0)),
        compiler_params=pltpu.CompilerParams(dimension_semantics=("arbitrary",)),
    )(x2, pos2, slab)
    return out2.reshape(B, S, D)


# ------------------------- parameters / pos embedding -------------------------
def pos_sinusoid_embedding(seq_len, d_model):
    pos = jnp.arange(seq_len, dtype=jnp.float32)[:, None]               # (L, 1)
    i = jnp.arange(d_model, dtype=jnp.float32)[None, :]                 # (1, D)
    angle = pos / jnp.power(10000.0, 2.0 * jnp.floor(i / 2.0) / d_model)
    even = (jnp.arange(d_model) % 2) == 0
    return jnp.where(even[None, :], jnp.sin(angle), jnp.cos(angle))     # (L, D)


def init_layer_params(key, dim, n_heads, dff):
    hdim = dim // n_heads
    ks = jax.random.split(key, 12)
    s_in = 1.0 / jnp.sqrt(dim)
    s_h = 1.0 / jnp.sqrt(n_heads * hdim)
    s_ff = 1.0 / jnp.sqrt(dff)
    wq = jax.random.normal(ks[0], (dim, n_heads * hdim), jnp.float32) * s_in
    wk = jax.random.normal(ks[1], (dim, n_heads * hdim), jnp.float32) * s_in
    wv = jax.random.normal(ks[2], (dim, n_heads * hdim), jnp.float32) * s_in
    wo = jax.random.normal(ks[3], (n_heads * hdim, dim), jnp.float32) * s_h
    w1 = jax.random.normal(ks[4], (dim, dff), jnp.float32) * s_in
    w2 = jax.random.normal(ks[5], (dff, dim), jnp.float32) * s_ff
    bq = jax.random.normal(ks[6], (1, n_heads * hdim), jnp.float32) * 0.02
    bk = jax.random.normal(ks[7], (1, n_heads * hdim), jnp.float32) * 0.02
    bv = jax.random.normal(ks[8], (1, n_heads * hdim), jnp.float32) * 0.02
    bo = jax.random.normal(ks[9], (1, dim), jnp.float32) * 0.02
    b1 = jax.random.normal(ks[10], (1, dff), jnp.float32) * 0.02
    b2 = jax.random.normal(ks[11], (1, dim), jnp.float32) * 0.02
    g1 = jnp.ones((1, dim), jnp.float32)
    be1 = jnp.zeros((1, dim), jnp.float32)
    g2 = jnp.ones((1, dim), jnp.float32)
    be2 = jnp.zeros((1, dim), jnp.float32)
    attn_params = (wq, bq, wk, bk, wv, bv, wo, bo, g1, be1)
    ffn_params = (w1, b1, w2, b2, g2, be2)
    return attn_params, ffn_params


def pack_params(layer_params):
    """Pack every layer's weights into one lane-dense (L, R_TOTAL, 128) slab.
    The 1/sqrt(hd) attention scale is folded into the Q projection columns."""
    scale = 1.0 / (HDIM ** 0.5)
    slabs = []
    for (wq, bq, wk, bk, wv, bv, wo, bo, g1, be1), (w1, b1, w2, b2, g2, be2) in layer_params:
        slab = jnp.zeros((R_TOTAL, LANES), jnp.float32)
        wqkv = jnp.concatenate([wq * scale, wk, wv], axis=1)          # (D, 3*H*hd)
        bqkv = jnp.concatenate([bq * scale, bk, bv], axis=1)          # (1, 3*H*hd)
        slab = slab.at[R_WQKV:R_WQKV + ENC_DIM, :QKV_COLS].set(wqkv)
        slab = slab.at[R_WO:R_WO + ENC_DIM, :ENC_DIM].set(wo)
        slab = slab.at[R_W1:R_W1 + ENC_DIM, :DFF].set(w1)
        slab = slab.at[R_W2:R_W2 + DFF, :ENC_DIM].set(w2)
        slab = slab.at[R_BIAS + B_QKV, :QKV_COLS].set(bqkv[0])
        slab = slab.at[R_BIAS + B_O, :ENC_DIM].set(bo[0])
        slab = slab.at[R_BIAS + B_G1, :ENC_DIM].set(g1[0])
        slab = slab.at[R_BIAS + B_B1N, :ENC_DIM].set(be1[0])
        slab = slab.at[R_BIAS + B_FF1, :DFF].set(b1[0])
        slab = slab.at[R_BIAS + B_FF2, :ENC_DIM].set(b2[0])
        slab = slab.at[R_BIAS + B_G2, :ENC_DIM].set(g2[0])
        slab = slab.at[R_BIAS + B_B2N, :ENC_DIM].set(be2[0])
        slabs.append(slab)
    return jnp.stack(slabs, axis=0)                                    # (L, 168, 128)


# ------------------------------ pure-JAX reference ------------------------------
def _ref_layernorm(x, g, b):
    m = jnp.mean(x, -1, keepdims=True)
    v = jnp.mean((x - m) ** 2, -1, keepdims=True)
    return (x - m) / jnp.sqrt(v + EPS) * g + b


def encoder_reference(x, layer_params, pos_table):
    B, S, D = x.shape
    out = x + pos_table[:S][None]
    for (wq, bq, wk, bk, wv, bv, wo, bo, g1, be1), (w1, b1, w2, b2, g2, be2) in layer_params:
        q = out @ wq + bq
        k = out @ wk + bk
        v = out @ wv + bv
        qh = q.reshape(B, S, NUM_HEADS, HDIM).transpose(0, 2, 1, 3)
        kh = k.reshape(B, S, NUM_HEADS, HDIM).transpose(0, 2, 1, 3)
        vh = v.reshape(B, S, NUM_HEADS, HDIM).transpose(0, 2, 1, 3)
        s = jnp.einsum("bhqd,bhkd->bhqk", qh, kh) / jnp.sqrt(HDIM)
        p = jax.nn.softmax(s, axis=-1)
        ctx = jnp.einsum("bhqk,bhkd->bhqd", p, vh).transpose(0, 2, 1, 3).reshape(B, S, -1)
        attn_out = ctx @ wo + bo
        out = _ref_layernorm(out + attn_out, g1, be1)
        f = jnp.maximum(out @ w1 + b1, 0.0) @ w2 + b2
        out = _ref_layernorm(out + f, g2, be2)
    return out


# ----------------------------------- main ---------------------------------------
if __name__ == "__main__":
    key = jax.random.PRNGKey(0)
    k_x, k_p = jax.random.split(key)
    x = jax.random.normal(k_x, (BATCH, SEQ, ENC_DIM), jnp.float32)

    pos_table = pos_sinusoid_embedding(TGT_LEN, ENC_DIM)
    layer_keys = jax.random.split(k_p, NUM_LAYERS)
    layer_params = [init_layer_params(layer_keys[i], ENC_DIM, NUM_HEADS, DFF)
                    for i in range(NUM_LAYERS)]
    slab = pack_params(layer_params)

    out = encoder_forward(x, slab, pos_table)
    out = jax.block_until_ready(out)

    ref = encoder_reference(x, layer_params, pos_table)
    assert out.shape == (BATCH, SEQ, ENC_DIM)
    assert jnp.allclose(out, ref, rtol=1e-2, atol=1e-2), "mismatch vs reference"

    print("KERNEL_OK")
</pallas_src>

<mosaic_0001>
module attributes {stable_mosaic.version = 11 : i64} {
  func.func @encoder_kernel(%arg0: i32, %arg1: memref<16x32xf32, #tpu.memory_space<vmem>>, %arg2: memref<16x32xf32, #tpu.memory_space<vmem>>, %arg3: memref<2x168x128xf32, #tpu.memory_space<vmem>>, %arg4: memref<16x32xf32, #tpu.memory_space<vmem>>) attributes {dimension_semantics = [#tpu.dimension_semantics<arbitrary>], iteration_bounds = array<i64: 1>, scalar_prefetch = 0 : i64, scratch_operands = 0 : i64, tpu.core_type = #tpu.core_type<tc>, window_params = [{pipeline_mode = #tpu.pipeline_mode<synchronous>, transform_indices = @transform_0, window_bounds = array<i64: 16, 32>}, {pipeline_mode = #tpu.pipeline_mode<synchronous>, transform_indices = @transform_1, window_bounds = array<i64: 16, 32>}, {pipeline_mode = #tpu.pipeline_mode<synchronous>, transform_indices = @transform_2, window_bounds = array<i64: 2, 168, 128>}, {pipeline_mode = #tpu.pipeline_mode<synchronous>, transform_indices = @transform_3, window_bounds = array<i64: 16, 32>}]} {
    %c0 = arith.constant 0 : index
    %c0_0 = arith.constant 0 : index
    %0 = vector.load %arg1[%c0, %c0_0] : memref<16x32xf32, #tpu.memory_space<vmem>>, vector<16x32xf32>
    %c0_1 = arith.constant 0 : index
    %c0_2 = arith.constant 0 : index
    %1 = vector.load %arg2[%c0_1, %c0_2] : memref<16x32xf32, #tpu.memory_space<vmem>>, vector<16x32xf32>
    %2 = arith.addf %0, %1 : vector<16x32xf32>
    %c0_3 = arith.constant 0 : index
    %c0_4 = arith.constant 0 : index
    %c0_5 = arith.constant 0 : index
    %3 = vector.load %arg3[%c0_3, %c0_4, %c0_5] : memref<2x168x128xf32, #tpu.memory_space<vmem>>, vector<1x32x96xf32>
    %4 = vector.shape_cast %3 : vector<1x32x96xf32> to vector<32x96xf32>
    %c0_6 = arith.constant 0 : index
    %c160 = arith.constant 160 : index
    %c0_7 = arith.constant 0 : index
    %5 = vector.load %arg3[%c0_6, %c160, %c0_7] : memref<2x168x128xf32, #tpu.memory_space<vmem>>, vector<1x1x96xf32>
    %6 = vector.shape_cast %5 : vector<1x1x96xf32> to vector<1x96xf32>
    %cst = arith.constant dense<0.000000e+00> : vector<16x96xf32>
    %7 = tpu.matmul %2, %4, %cst {dimension_numbers = #tpu.dot_dimension_numbers<[1], [0], [0], [1], [0, 0, 1, 1], [], []>} : vector<16x32xf32>, vector<32x96xf32>, vector<16x96xf32> -> vector<16x96xf32>
    %8 = vector.broadcast %6 : vector<1x96xf32> to vector<16x96xf32>
    %9 = arith.addf %7, %8 : vector<16x96xf32>
    %10 = vector.extract_strided_slice %9 {offsets = [0, 0], sizes = [8, 8], strides = [1, 1]} : vector<16x96xf32> to vector<8x8xf32>
    %11 = vector.extract_strided_slice %9 {offsets = [8, 0], sizes = [8, 8], strides = [1, 1]} : vector<16x96xf32> to vector<8x8xf32>
    %12 = vector.extract_strided_slice %9 {offsets = [0, 8], sizes = [8, 8], strides = [1, 1]} : vector<16x96xf32> to vector<8x8xf32>
    %13 = vector.extract_strided_slice %9 {offsets = [8, 8], sizes = [8, 8], strides = [1, 1]} : vector<16x96xf32> to vector<8x8xf32>
    %14 = vector.extract_strided_slice %9 {offsets = [0, 16], sizes = [8, 8], strides = [1, 1]} : vector<16x96xf32> to vector<8x8xf32>
    %15 = vector.extract_strided_slice %9 {offsets = [8, 16], sizes = [8, 8], strides = [1, 1]} : vector<16x96xf32> to vector<8x8xf32>
    %16 = vector.extract_strided_slice %9 {offsets = [0, 24], sizes = [8, 8], strides = [1, 1]} : vector<16x96xf32> to vector<8x8xf32>
    %17 = vector.extract_strided_slice %9 {offsets = [8, 24], sizes = [8, 8], strides = [1, 1]} : vector<16x96xf32> to vector<8x8xf32>
    %18 = vector.shape_cast %10 : vector<8x8xf32> to vector<1x8x8xf32>
    %19 = vector.shape_cast %11 : vector<8x8xf32> to vector<1x8x8xf32>
    %20 = vector.shape_cast %12 : vector<8x8xf32> to vector<1x8x8xf32>
    %21 = vector.shape_cast %13 : vector<8x8xf32> to vector<1x8x8xf32>
    %22 = vector.shape_cast %14 : vector<8x8xf32> to vector<1x8x8xf32>
    %23 = vector.shape_cast %15 : vector<8x8xf32> to vector<1x8x8xf32>
    %24 = vector.shape_cast %16 : vector<8x8xf32> to vector<1x8x8xf32>
    %25 = vector.shape_cast %17 : vector<8x8xf32> to vector<1x8x8xf32>
    %26 = tpu.concatenate %18, %19, %20, %21, %22, %23, %24, %25 in 0 : vector<1x8x8xf32>, vector<1x8x8xf32>, vector<1x8x8xf32>, vector<1x8x8xf32>, vector<1x8x8xf32>, vector<1x8x8xf32>, vector<1x8x8xf32>, vector<1x8x8xf32> -> vector<8x8x8xf32>
    %27 = vector.extract_strided_slice %9 {offsets = [0, 32], sizes = [8, 8], strides = [1, 1]} : vector<16x96xf32> to vector<8x8xf32>
    %28 = vector.extract_strided_slice %9 {offsets = [8, 32], sizes = [8, 8], strides = [1, 1]} : vector<16x96xf32> to vector<8x8xf32>
    %29 = vector.extract_strided_slice %9 {offsets = [0, 40], sizes = [8, 8], strides = [1, 1]} : vector<16x96xf32> to vector<8x8xf32>
    %30 = vector.extract_strided_slice %9 {offsets = [8, 40], sizes = [8, 8], strides = [1, 1]} : vector<16x96xf32> to vector<8x8xf32>
    %31 = vector.extract_strided_slice %9 {offsets = [0, 48], sizes = [8, 8], strides = [1, 1]} : vector<16x96xf32> to vector<8x8xf32>
    %32 = vector.extract_strided_slice %9 {offsets = [8, 48], sizes = [8, 8], strides = [1, 1]} : vector<16x96xf32> to vector<8x8xf32>
    %33 = vector.extract_strided_slice %9 {offsets = [0, 56], sizes = [8, 8], strides = [1, 1]} : vector<16x96xf32> to vector<8x8xf32>
    %34 = vector.extract_strided_slice %9 {offsets = [8, 56], sizes = [8, 8], strides = [1, 1]} : vector<16x96xf32> to vector<8x8xf32>
    %35 = vector.shape_cast %27 : vector<8x8xf32> to vector<1x8x8xf32>
    %36 = vector.shape_cast %28 : vector<8x8xf32> to vector<1x8x8xf32>
    %37 = vector.shape_cast %29 : vector<8x8xf32> to vector<1x8x8xf32>
    %38 = vector.shape_cast %30 : vector<8x8xf32> to vector<1x8x8xf32>
    %39 = vector.shape_cast %31 : vector<8x8xf32> to vector<1x8x8xf32>
    %40 = vector.shape_cast %32 : vector<8x8xf32> to vector<1x8x8xf32>
    %41 = vector.shape_cast %33 : vector<8x8xf32> to vector<1x8x8xf32>
    %42 = vector.shape_cast %34 : vector<8x8xf32> to vector<1x8x8xf32>
    %43 = tpu.concatenate %35, %36, %37, %38, %39, %40, %41, %42 in 0 : vector<1x8x8xf32>, vector<1x8x8xf32>, vector<1x8x8xf32>, vector<1x8x8xf32>, vector<1x8x8xf32>, vector<1x8x8xf32>, vector<1x8x8xf32>, vector<1x8x8xf32> -> vector<8x8x8xf32>
    %44 = vector.extract_strided_slice %9 {offsets = [0, 64], sizes = [8, 8], strides = [1, 1]} : vector<16x96xf32> to vector<8x8xf32>
    %45 = vector.extract_strided_slice %9 {offsets = [8, 64], sizes = [8, 8], strides = [1, 1]} : vector<16x96xf32> to vector<8x8xf32>
    %46 = vector.extract_strided_slice %9 {offsets = [0, 72], sizes = [8, 8], strides = [1, 1]} : vector<16x96xf32> to vector<8x8xf32>
    %47 = vector.extract_strided_slice %9 {offsets = [8, 72], sizes = [8, 8], strides = [1, 1]} : vector<16x96xf32> to vector<8x8xf32>
    %48 = vector.extract_strided_slice %9 {offsets = [0, 80], sizes = [8, 8], strides = [1, 1]} : vector<16x96xf32> to vector<8x8xf32>
    %49 = vector.extract_strided_slice %9 {offsets = [8, 80], sizes = [8, 8], strides = [1, 1]} : vector<16x96xf32> to vector<8x8xf32>
    %50 = vector.extract_strided_slice %9 {offsets = [0, 88], sizes = [8, 8], strides = [1, 1]} : vector<16x96xf32> to vector<8x8xf32>
    %51 = vector.extract_strided_slice %9 {offsets = [8, 88], sizes = [8, 8], strides = [1, 1]} : vector<16x96xf32> to vector<8x8xf32>
    %52 = vector.shape_cast %44 : vector<8x8xf32> to vector<1x8x8xf32>
    %53 = vector.shape_cast %45 : vector<8x8xf32> to vector<1x8x8xf32>
    %54 = vector.shape_cast %46 : vector<8x8xf32> to vector<1x8x8xf32>
    %55 = vector.shape_cast %47 : vector<8x8xf32> to vector<1x8x8xf32>
    %56 = vector.shape_cast %48 : vector<8x8xf32> to vector<1x8x8xf32>
    %57 = vector.shape_cast %49 : vector<8x8xf32> to vector<1x8x8xf32>
    %58 = vector.shape_cast %50 : vector<8x8xf32> to vector<1x8x8xf32>
    %59 = vector.shape_cast %51 : vector<8x8xf32> to vector<1x8x8xf32>
    %60 = tpu.concatenate %52, %53, %54, %55, %56, %57, %58, %59 in 0 : vector<1x8x8xf32>, vector<1x8x8xf32>, vector<1x8x8xf32>, vector<1x8x8xf32>, vector<1x8x8xf32>, vector<1x8x8xf32>, vector<1x8x8xf32>, vector<1x8x8xf32> -> vector<8x8x8xf32>
    %cst_8 = arith.constant dense<0.000000e+00> : vector<8x8x8xf32>
    %61 = tpu.matmul %26, %43, %cst_8 {dimension_numbers = #tpu.dot_dimension_numbers<[2], [2], [1], [1], [0, 0, 0, 1, 1, 1], [0], [0]>} : vector<8x8x8xf32>, vector<8x8x8xf32>, vector<8x8x8xf32> -> vector<8x8x8xf32>
    %cst_9 = arith.constant dense<0xFF800000> : vector<8x8xf32>
    %62 = vector.multi_reduction <maximumf>, %61, %cst_9 [2] : vector<8x8x8xf32> to vector<8x8xf32>
    %63 = vector.shape_cast %62 : vector<8x8xf32> to vector<8x8x1xf32>
    %64 = vector.broadcast %63 : vector<8x8x1xf32> to vector<8x8x8xf32>
    %65 = arith.subf %61, %64 : vector<8x8x8xf32>
    %66 = math.exp %65 : vector<8x8x8xf32>
    %cst_10 = arith.constant dense<0.000000e+00> : vector<8x8xf32>
    %67 = vector.multi_reduction <add>, %66, %cst_10 [2] : vector<8x8x8xf32> to vector<8x8xf32>
    %68 = vector.shape_cast %67 : vector<8x8xf32> to vector<8x8x1xf32>
    %69 = tpu.reciprocal %68 {approx = true} : vector<8x8x1xf32> -> vector<8x8x1xf32>
    %70 = vector.broadcast %69 : vector<8x8x1xf32> to vector<8x8x8xf32>
    %71 = arith.mulf %66, %70 : vector<8x8x8xf32>
    %cst_11 = arith.constant dense<0.000000e+00> : vector<8x8x8xf32>
    %72 = tpu.matmul %71, %60, %cst_11 {dimension_numbers = #tpu.dot_dimension_numbers<[2], [1], [1], [2], [0, 0, 0, 1, 1, 2], [0], [0]>} : vector<8x8x8xf32>, vector<8x8x8xf32>, vector<8x8x8xf32> -> vector<8x8x8xf32>
    %73 = vector.shape_cast %72 : vector<8x8x8xf32> to vector<4x16x8xf32>
    %c0_12 = arith.constant 0 : index
    %c32 = arith.constant 32 : index
    %c0_13 = arith.constant 0 : index
    %74 = vector.load %arg3[%c0_12, %c32, %c0_13] : memref<2x168x128xf32, #tpu.memory_space<vmem>>, vector<1x32x32xf32>
    %75 = vector.shape_cast %74 : vector<1x32x32xf32> to vector<32x32xf32>
    %76 = vector.shape_cast %75 : vector<32x32xf32> to vector<4x8x32xf32>
    %c0_14 = arith.constant 0 : index
    %c161 = arith.constant 161 : index
    %c0_15 = arith.constant 0 : index
    %77 = vector.load %arg3[%c0_14, %c161, %c0_15] : memref<2x168x128xf32, #tpu.memory_space<vmem>>, vector<1x1x32xf32>
    %78 = vector.shape_cast %77 : vector<1x1x32xf32> to vector<1x32xf32>
    %cst_16 = arith.constant dense<0.000000e+00> : vector<4x16x32xf32>
    %79 = tpu.matmul %73, %76, %cst_16 {dimension_numbers = #tpu.dot_dimension_numbers<[2], [1], [1], [2], [0, 0, 0, 1, 1, 2], [0], [0]>} : vector<4x16x8xf32>, vector<4x8x32xf32>, vector<4x16x32xf32> -> vector<4x16x32xf32>
    %cst_17 = arith.constant dense<0.000000e+00> : vector<16x32xf32>
    %80 = vector.multi_reduction <add>, %79, %cst_17 [0] : vector<4x16x32xf32> to vector<16x32xf32>
    %81 = vector.broadcast %78 : vector<1x32xf32> to vector<16x32xf32>
    %82 = arith.addf %80, %81 : vector<16x32xf32>
    %c0_18 = arith.constant 0 : index
    %c162 = arith.constant 162 : index
    %c0_19 = arith.constant 0 : index
    %83 = vector.load %arg3[%c0_18, %c162, %c0_19] : memref<2x168x128xf32, #tpu.memory_space<vmem>>, vector<1x1x32xf32>
    %84 = vector.shape_cast %83 : vector<1x1x32xf32> to vector<1x32xf32>
    %c0_20 = arith.constant 0 : index
    %c163 = arith.constant 163 : index
    %c0_21 = arith.constant 0 : index
    %85 = vector.load %arg3[%c0_20, %c163, %c0_21] : memref<2x168x128xf32, #tpu.memory_space<vmem>>, vector<1x1x32xf32>
    %86 = vector.shape_cast %85 : vector<1x1x32xf32> to vector<1x32xf32>
    %87 = arith.addf %2, %82 : vector<16x32xf32>
    %cst_22 = arith.constant dense<0.000000e+00> : vector<16xf32>
    %88 = vector.multi_reduction <add>, %87, %cst_22 [1] : vector<16x32xf32> to vector<16xf32>
    %89 = vector.shape_cast %88 : vector<16xf32> to vector<16x1xf32>
    %cst_23 = arith.constant 3.200000e+01 : f32
    %90 = vector.broadcast %cst_23 : f32 to vector<16x1xf32>
    %91 = arith.divf %89, %90 : vector<16x1xf32>
    %92 = vector.broadcast %91 : vector<16x1xf32> to vector<16x32xf32>
    %93 = arith.subf %87, %92 : vector<16x32xf32>
    %94 = arith.mulf %93, %93 : vector<16x32xf32>
    %cst_24 = arith.constant dense<0.000000e+00> : vector<16xf32>
    %95 = vector.multi_reduction <add>, %94, %cst_24 [1] : vector<16x32xf32> to vector<16xf32>
    %96 = vector.shape_cast %95 : vector<16xf32> to vector<16x1xf32>
    %cst_25 = arith.constant 3.200000e+01 : f32
    %97 = vector.broadcast %cst_25 : f32 to vector<16x1xf32>
    %98 = arith.divf %96, %97 : vector<16x1xf32>
    %99 = vector.broadcast %91 : vector<16x1xf32> to vector<16x32xf32>
    %100 = arith.subf %87, %99 : vector<16x32xf32>
    %cst_26 = arith.constant 9.99999974E-6 : f32
    %101 = vector.broadcast %cst_26 : f32 to vector<16x1xf32>
    %102 = arith.addf %98, %101 : vector<16x1xf32>
    %103 = math.rsqrt %102 : vector<16x1xf32>
    %104 = vector.broadcast %103 : vector<16x1xf32> to vector<16x32xf32>
    %105 = arith.mulf %100, %104 : vector<16x32xf32>
    %106 = vector.broadcast %84 : vector<1x32xf32> to vector<16x32xf32>
    %107 = arith.mulf %105, %106 : vector<16x32xf32>
    %108 = vector.broadcast %86 : vector<1x32xf32> to vector<16x32xf32>
    %109 = arith.addf %107, %108 : vector<16x32xf32>
    %c0_27 = arith.constant 0 : index
    %c64 = arith.constant 64 : index
    %c0_28 = arith.constant 0 : index
    %110 = vector.load %arg3[%c0_27, %c64, %c0_28] : memref<2x168x128xf32, #tpu.memory_space<vmem>>, vector<1x32x64xf32>
    %111 = vector.shape_cast %110 : vector<1x32x64xf32> to vector<32x64xf32>
    %c0_29 = arith.constant 0 : index
    %c164 = arith.constant 164 : index
    %c0_30 = arith.constant 0 : index
    %112 = vector.load %arg3[%c0_29, %c164, %c0_30] : memref<2x168x128xf32, #tpu.memory_space<vmem>>, vector<1x1x64xf32>
    %113 = vector.shape_cast %112 : vector<1x1x64xf32> to vector<1x64xf32>
    %c0_31 = arith.constant 0 : index
    %c96 = arith.constant 96 : index
    %c0_32 = arith.constant 0 : index
    %114 = vector.load %arg3[%c0_31, %c96, %c0_32] : memref<2x168x128xf32, #tpu.memory_space<vmem>>, vector<1x64x32xf32>
    %115 = vector.shape_cast %114 : vector<1x64x32xf32> to vector<64x32xf32>
    %c0_33 = arith.constant 0 : index
    %c165 = arith.constant 165 : index
    %c0_34 = arith.constant 0 : index
    %116 = vector.load %arg3[%c0_33, %c165, %c0_34] : memref<2x168x128xf32, #tpu.memory_space<vmem>>, vector<1x1x32xf32>
    %117 = vector.shape_cast %116 : vector<1x1x32xf32> to vector<1x32xf32>
    %cst_35 = arith.constant dense<0.000000e+00> : vector<16x64xf32>
    %118 = tpu.matmul %109, %111, %cst_35 {dimension_numbers = #tpu.dot_dimension_numbers<[1], [0], [0], [1], [0, 0, 1, 1], [], []>} : vector<16x32xf32>, vector<32x64xf32>, vector<16x64xf32> -> vector<16x64xf32>
    %119 = vector.broadcast %113 : vector<1x64xf32> to vector<16x64xf32>
    %120 = arith.addf %118, %119 : vector<16x64xf32>
    %cst_36 = arith.constant 0.000000e+00 : f32
    %121 = vector.broadcast %cst_36 : f32 to vector<16x64xf32>
    %122 = arith.maximumf %120, %121 : vector<16x64xf32>
    %cst_37 = arith.constant dense<0.000000e+00> : vector<16x32xf32>
    %123 = tpu.matmul %122, %115, %cst_37 {dimension_numbers = #tpu.dot_dimension_numbers<[1], [0], [0], [1], [0, 0, 1, 1], [], []>} : vector<16x64xf32>, vector<64x32xf32>, vector<16x32xf32> -> vector<16x32xf32>
    %124 = vector.broadcast %117 : vector<1x32xf32> to vector<16x32xf32>
    %125 = arith.addf %123, %124 : vector<16x32xf32>
    %c0_38 = arith.constant 0 : index
    %c166 = arith.constant 166 : index
    %c0_39 = arith.constant 0 : index
    %126 = vector.load %arg3[%c0_38, %c166, %c0_39] : memref<2x168x128xf32, #tpu.memory_space<vmem>>, vector<1x1x32xf32>
    %127 = vector.shape_cast %126 : vector<1x1x32xf32> to vector<1x32xf32>
    %c0_40 = arith.constant 0 : index
    %c167 = arith.constant 167 : index
    %c0_41 = arith.constant 0 : index
    %128 = vector.load %arg3[%c0_40, %c167, %c0_41] : memref<2x168x128xf32, #tpu.memory_space<vmem>>, vector<1x1x32xf32>
    %129 = vector.shape_cast %128 : vector<1x1x32xf32> to vector<1x32xf32>
    %130 = arith.addf %109, %125 : vector<16x32xf32>
    %cst_42 = arith.constant dense<0.000000e+00> : vector<16xf32>
    %131 = vector.multi_reduction <add>, %130, %cst_42 [1] : vector<16x32xf32> to vector<16xf32>
    %132 = vector.shape_cast %131 : vector<16xf32> to vector<16x1xf32>
    %cst_43 = arith.constant 3.200000e+01 : f32
    %133 = vector.broadcast %cst_43 : f32 to vector<16x1xf32>
    %134 = arith.divf %132, %133 : vector<16x1xf32>
    %135 = vector.broadcast %134 : vector<16x1xf32> to vector<16x32xf32>
    %136 = arith.subf %130, %135 : vector<16x32xf32>
    %137 = arith.mulf %136, %136 : vector<16x32xf32>
    %cst_44 = arith.constant dense<0.000000e+00> : vector<16xf32>
    %138 = vector.multi_reduction <add>, %137, %cst_44 [1] : vector<16x32xf32> to vector<16xf32>
    %139 = vector.shape_cast %138 : vector<16xf32> to vector<16x1xf32>
    %cst_45 = arith.constant 3.200000e+01 : f32
    %140 = vector.broadcast %cst_45 : f32 to vector<16x1xf32>
    %141 = arith.divf %139, %140 : vector<16x1xf32>
    %142 = vector.broadcast %134 : vector<16x1xf32> to vector<16x32xf32>
    %143 = arith.subf %130, %142 : vector<16x32xf32>
    %cst_46 = arith.constant 9.99999974E-6 : f32
    %144 = vector.broadcast %cst_46 : f32 to vector<16x1xf32>
    %145 = arith.addf %141, %144 : vector<16x1xf32>
    %146 = math.rsqrt %145 : vector<16x1xf32>
    %147 = vector.broadcast %146 : vector<16x1xf32> to vector<16x32xf32>
    %148 = arith.mulf %143, %147 : vector<16x32xf32>
    %149 = vector.broadcast %127 : vector<1x32xf32> to vector<16x32xf32>
    %150 = arith.mulf %148, %149 : vector<16x32xf32>
    %151 = vector.broadcast %129 : vector<1x32xf32> to vector<16x32xf32>
    %152 = arith.addf %150, %151 : vector<16x32xf32>
    %c1 = arith.constant 1 : index
    %c0_47 = arith.constant 0 : index
    %c0_48 = arith.constant 0 : index
    %153 = vector.load %arg3[%c1, %c0_47, %c0_48] : memref<2x168x128xf32, #tpu.memory_space<vmem>>, vector<1x32x96xf32>
    %154 = vector.shape_cast %153 : vector<1x32x96xf32> to vector<32x96xf32>
    %c1_49 = arith.constant 1 : index
    %c160_50 = arith.constant 160 : index
    %c0_51 = arith.constant 0 : index
    %155 = vector.load %arg3[%c1_49, %c160_50, %c0_51] : memref<2x168x128xf32, #tpu.memory_space<vmem>>, vector<1x1x96xf32>
    %156 = vector.shape_cast %155 : vector<1x1x96xf32> to vector<1x96xf32>
    %cst_52 = arith.constant dense<0.000000e+00> : vector<16x96xf32>
    %157 = tpu.matmul %152, %154, %cst_52 {dimension_numbers = #tpu.dot_dimension_numbers<[1], [0], [0], [1], [0, 0, 1, 1], [], []>} : vector<16x32xf32>, vector<32x96xf32>, vector<16x96xf32> -> vector<16x96xf32>
    %158 = vector.broadcast %156 : vector<1x96xf32> to vector<16x96xf32>
    %159 = arith.addf %157, %158 : vector<16x96xf32>
    %160 = vector.extract_strided_slice %159 {offsets = [0, 0], sizes = [8, 8], strides = [1, 1]} : vector<16x96xf32> to vector<8x8xf32>
    %161 = vector.extract_strided_slice %159 {offsets = [8, 0], sizes = [8, 8], strides = [1, 1]} : vector<16x96xf32> to vector<8x8xf32>
    %162 = vector.extract_strided_slice %159 {offsets = [0, 8], sizes = [8, 8], strides = [1, 1]} : vector<16x96xf32> to vector<8x8xf32>
    %163 = vector.extract_strided_slice %159 {offsets = [8, 8], sizes = [8, 8], strides = [1, 1]} : vector<16x96xf32> to vector<8x8xf32>
    %164 = vector.extract_strided_slice %159 {offsets = [0, 16], sizes = [8, 8], strides = [1, 1]} : vector<16x96xf32> to vector<8x8xf32>
    %165 = vector.extract_strided_slice %159 {offsets = [8, 16], sizes = [8, 8], strides = [1, 1]} : vector<16x96xf32> to vector<8x8xf32>
    %166 = vector.extract_strided_slice %159 {offsets = [0, 24], sizes = [8, 8], strides = [1, 1]} : vector<16x96xf32> to vector<8x8xf32>
    %167 = vector.extract_strided_slice %159 {offsets = [8, 24], sizes = [8, 8], strides = [1, 1]} : vector<16x96xf32> to vector<8x8xf32>
    %168 = vector.shape_cast %160 : vector<8x8xf32> to vector<1x8x8xf32>
    %169 = vector.shape_cast %161 : vector<8x8xf32> to vector<1x8x8xf32>
    %170 = vector.shape_cast %162 : vector<8x8xf32> to vector<1x8x8xf32>
    %171 = vector.shape_cast %163 : vector<8x8xf32> to vector<1x8x8xf32>
    %172 = vector.shape_cast %164 : vector<8x8xf32> to vector<1x8x8xf32>
    %173 = vector.shape_cast %165 : vector<8x8xf32> to vector<1x8x8xf32>
    %174 = vector.shape_cast %166 : vector<8x8xf32> to vector<1x8x8xf32>
    %175 = vector.shape_cast %167 : vector<8x8xf32> to vector<1x8x8xf32>
    %176 = tpu.concatenate %168, %169, %170, %171, %172, %173, %174, %175 in 0 : vector<1x8x8xf32>, vector<1x8x8xf32>, vector<1x8x8xf32>, vector<1x8x8xf32>, vector<1x8x8xf32>, vector<1x8x8xf32>, vector<1x8x8xf32>, vector<1x8x8xf32> -> vector<8x8x8xf32>
    %177 = vector.extract_strided_slice %159 {offsets = [0, 32], sizes = [8, 8], strides = [1, 1]} : vector<16x96xf32> to vector<8x8xf32>
    %178 = vector.extract_strided_slice %159 {offsets = [8, 32], sizes = [8, 8], strides = [1, 1]} : vector<16x96xf32> to vector<8x8xf32>
    %179 = vector.extract_strided_slice %159 {offsets = [0, 40], sizes = [8, 8], strides = [1, 1]} : vector<16x96xf32> to vector<8x8xf32>
    %180 = vector.extract_strided_slice %159 {offsets = [8, 40], sizes = [8, 8], strides = [1, 1]} : vector<16x96xf32> to vector<8x8xf32>
    %181 = vector.extract_strided_slice %159 {offsets = [0, 48], sizes = [8, 8], strides = [1, 1]} : vector<16x96xf32> to vector<8x8xf32>
    %182 = vector.extract_strided_slice %159 {offsets = [8, 48], sizes = [8, 8], strides = [1, 1]} : vector<16x96xf32> to vector<8x8xf32>
    %183 = vector.extract_strided_slice %159 {offsets = [0, 56], sizes = [8, 8], strides = [1, 1]} : vector<16x96xf32> to vector<8x8xf32>
    %184 = vector.extract_strided_slice %159 {offsets = [8, 56], sizes = [8, 8], strides = [1, 1]} : vector<16x96xf32> to vector<8x8xf32>
    %185 = vector.shape_cast %177 : vector<8x8xf32> to vector<1x8x8xf32>
    %186 = vector.shape_cast %178 : vector<8x8xf32> to vector<1x8x8xf32>
    %187 = vector.shape_cast %179 : vector<8x8xf32> to vector<1x8x8xf32>
    %188 = vector.shape_cast %180 : vector<8x8xf32> to vector<1x8x8xf32>
    %189 = vector.shape_cast %181 : vector<8x8xf32> to vector<1x8x8xf32>
    %190 = vector.shape_cast %182 : vector<8x8xf32> to vector<1x8x8xf32>
    %191 = vector.shape_cast %183 : vector<8x8xf32> to vector<1x8x8xf32>
    %192 = vector.shape_cast %184 : vector<8x8xf32> to vector<1x8x8xf32>
    %193 = tpu.concatenate %185, %186, %187, %188, %189, %190, %191, %192 in 0 : vector<1x8x8xf32>, vector<1x8x8xf32>, vector<1x8x8xf32>, vector<1x8x8xf32>, vector<1x8x8xf32>, vector<1x8x8xf32>, vector<1x8x8xf32>, vector<1x8x8xf32> -> vector<8x8x8xf32>
    %194 = vector.extract_strided_slice %159 {offsets = [0, 64], sizes = [8, 8], strides = [1, 1]} : vector<16x96xf32> to vector<8x8xf32>
    %195 = vector.extract_strided_slice %159 {offsets = [8, 64], sizes = [8, 8], strides = [1, 1]} : vector<16x96xf32> to vector<8x8xf32>
    %196 = vector.extract_strided_slice %159 {offsets = [0, 72], sizes = [8, 8], strides = [1, 1]} : vector<16x96xf32> to vector<8x8xf32>
    %197 = vector.extract_strided_slice %159 {offsets = [8, 72], sizes = [8, 8], strides = [1, 1]} : vector<16x96xf32> to vector<8x8xf32>
    %198 = vector.extract_strided_slice %159 {offsets = [0, 80], sizes = [8, 8], strides = [1, 1]} : vector<16x96xf32> to vector<8x8xf32>
    %199 = vector.extract_strided_slice %159 {offsets = [8, 80], sizes = [8, 8], strides = [1, 1]} : vector<16x96xf32> to vector<8x8xf32>
    %200 = vector.extract_strided_slice %159 {offsets = [0, 88], sizes = [8, 8], strides = [1, 1]} : vector<16x96xf32> to vector<8x8xf32>
    %201 = vector.extract_strided_slice %159 {offsets = [8, 88], sizes = [8, 8], strides = [1, 1]} : vector<16x96xf32> to vector<8x8xf32>
    %202 = vector.shape_cast %194 : vector<8x8xf32> to vector<1x8x8xf32>
    %203 = vector.shape_cast %195 : vector<8x8xf32> to vector<1x8x8xf32>
    %204 = vector.shape_cast %196 : vector<8x8xf32> to vector<1x8x8xf32>
    %205 = vector.shape_cast %197 : vector<8x8xf32> to vector<1x8x8xf32>
    %206 = vector.shape_cast %198 : vector<8x8xf32> to vector<1x8x8xf32>
    %207 = vector.shape_cast %199 : vector<8x8xf32> to vector<1x8x8xf32>
    %208 = vector.shape_cast %200 : vector<8x8xf32> to vector<1x8x8xf32>
    %209 = vector.shape_cast %201 : vector<8x8xf32> to vector<1x8x8xf32>
    %210 = tpu.concatenate %202, %203, %204, %205, %206, %207, %208, %209 in 0 : vector<1x8x8xf32>, vector<1x8x8xf32>, vector<1x8x8xf32>, vector<1x8x8xf32>, vector<1x8x8xf32>, vector<1x8x8xf32>, vector<1x8x8xf32>, vector<1x8x8xf32> -> vector<8x8x8xf32>
    %cst_53 = arith.constant dense<0.000000e+00> : vector<8x8x8xf32>
    %211 = tpu.matmul %176, %193, %cst_53 {dimension_numbers = #tpu.dot_dimension_numbers<[2], [2], [1], [1], [0, 0, 0, 1, 1, 1], [0], [0]>} : vector<8x8x8xf32>, vector<8x8x8xf32>, vector<8x8x8xf32> -> vector<8x8x8xf32>
    %cst_54 = arith.constant dense<0xFF800000> : vector<8x8xf32>
    %212 = vector.multi_reduction <maximumf>, %211, %cst_54 [2] : vector<8x8x8xf32> to vector<8x8xf32>
    %213 = vector.shape_cast %212 : vector<8x8xf32> to vector<8x8x1xf32>
    %214 = vector.broadcast %213 : vector<8x8x1xf32> to vector<8x8x8xf32>
    %215 = arith.subf %211, %214 : vector<8x8x8xf32>
    %216 = math.exp %215 : vector<8x8x8xf32>
    %cst_55 = arith.constant dense<0.000000e+00> : vector<8x8xf32>
    %217 = vector.multi_reduction <add>, %216, %cst_55 [2] : vector<8x8x8xf32> to vector<8x8xf32>
    %218 = vector.shape_cast %217 : vector<8x8xf32> to vector<8x8x1xf32>
    %219 = tpu.reciprocal %218 {approx = true} : vector<8x8x1xf32> -> vector<8x8x1xf32>
    %220 = vector.broadcast %219 : vector<8x8x1xf32> to vector<8x8x8xf32>
    %221 = arith.mulf %216, %220 : vector<8x8x8xf32>
    %cst_56 = arith.constant dense<0.000000e+00> : vector<8x8x8xf32>
    %222 = tpu.matmul %221, %210, %cst_56 {dimension_numbers = #tpu.dot_dimension_numbers<[2], [1], [1], [2], [0, 0, 0, 1, 1, 2], [0], [0]>} : vector<8x8x8xf32>, vector<8x8x8xf32>, vector<8x8x8xf32> -> vector<8x8x8xf32>
    %223 = vector.shape_cast %222 : vector<8x8x8xf32> to vector<4x16x8xf32>
    %c1_57 = arith.constant 1 : index
    %c32_58 = arith.constant 32 : index
    %c0_59 = arith.constant 0 : index
    %224 = vector.load %arg3[%c1_57, %c32_58, %c0_59] : memref<2x168x128xf32, #tpu.memory_space<vmem>>, vector<1x32x32xf32>
    %225 = vector.shape_cast %224 : vector<1x32x32xf32> to vector<32x32xf32>
    %226 = vector.shape_cast %225 : vector<32x32xf32> to vector<4x8x32xf32>
    %c1_60 = arith.constant 1 : index
    %c161_61 = arith.constant 161 : index
    %c0_62 = arith.constant 0 : index
    %227 = vector.load %arg3[%c1_60, %c161_61, %c0_62] : memref<2x168x128xf32, #tpu.memory_space<vmem>>, vector<1x1x32xf32>
    %228 = vector.shape_cast %227 : vector<1x1x32xf32> to vector<1x32xf32>
    %cst_63 = arith.constant dense<0.000000e+00> : vector<4x16x32xf32>
    %229 = tpu.matmul %223, %226, %cst_63 {dimension_numbers = #tpu.dot_dimension_numbers<[2], [1], [1], [2], [0, 0, 0, 1, 1, 2], [0], [0]>} : vector<4x16x8xf32>, vector<4x8x32xf32>, vector<4x16x32xf32> -> vector<4x16x32xf32>
    %cst_64 = arith.constant dense<0.000000e+00> : vector<16x32xf32>
    %230 = vector.multi_reduction <add>, %229, %cst_64 [0] : vector<4x16x32xf32> to vector<16x32xf32>
    %231 = vector.broadcast %228 : vector<1x32xf32> to vector<16x32xf32>
    %232 = arith.addf %230, %231 : vector<16x32xf32>
    %c1_65 = arith.constant 1 : index
    %c162_66 = arith.constant 162 : index
    %c0_67 = arith.constant 0 : index
    %233 = vector.load %arg3[%c1_65, %c162_66, %c0_67] : memref<2x168x128xf32, #tpu.memory_space<vmem>>, vector<1x1x32xf32>
    %234 = vector.shape_cast %233 : vector<1x1x32xf32> to vector<1x32xf32>
    %c1_68 = arith.constant 1 : index
    %c163_69 = arith.constant 163 : index
    %c0_70 = arith.constant 0 : index
    %235 = vector.load %arg3[%c1_68, %c163_69, %c0_70] : memref<2x168x128xf32, #tpu.memory_space<vmem>>, vector<1x1x32xf32>
    %236 = vector.shape_cast %235 : vector<1x1x32xf32> to vector<1x32xf32>
    %237 = arith.addf %152, %232 : vector<16x32xf32>
    %cst_71 = arith.constant dense<0.000000e+00> : vector<16xf32>
    %238 = vector.multi_reduction <add>, %237, %cst_71 [1] : vector<16x32xf32> to vector<16xf32>
    %239 = vector.shape_cast %238 : vector<16xf32> to vector<16x1xf32>
    %cst_72 = arith.constant 3.200000e+01 : f32
    %240 = vector.broadcast %cst_72 : f32 to vector<16x1xf32>
    %241 = arith.divf %239, %240 : vector<16x1xf32>
    %242 = vector.broadcast %241 : vector<16x1xf32> to vector<16x32xf32>
    %243 = arith.subf %237, %242 : vector<16x32xf32>
    %244 = arith.mulf %243, %243 : vector<16x32xf32>
    %cst_73 = arith.constant dense<0.000000e+00> : vector<16xf32>
    %245 = vector.multi_reduction <add>, %244, %cst_73 [1] : vector<16x32xf32> to vector<16xf32>
    %246 = vector.shape_cast %245 : vector<16xf32> to vector<16x1xf32>
    %cst_74 = arith.constant 3.200000e+01 : f32
    %247 = vector.broadcast %cst_74 : f32 to vector<16x1xf32>
    %248 = arith.divf %246, %247 : vector<16x1xf32>
    %249 = vector.broadcast %241 : vector<16x1xf32> to vector<16x32xf32>
    %250 = arith.subf %237, %249 : vector<16x32xf32>
    %cst_75 = arith.constant 9.99999974E-6 : f32
    %251 = vector.broadcast %cst_75 : f32 to vector<16x1xf32>
    %252 = arith.addf %248, %251 : vector<16x1xf32>
    %253 = math.rsqrt %252 : vector<16x1xf32>
    %254 = vector.broadcast %253 : vector<16x1xf32> to vector<16x32xf32>
    %255 = arith.mulf %250, %254 : vector<16x32xf32>
    %256 = vector.broadcast %234 : vector<1x32xf32> to vector<16x32xf32>
    %257 = arith.mulf %255, %256 : vector<16x32xf32>
    %258 = vector.broadcast %236 : vector<1x32xf32> to vector<16x32xf32>
    %259 = arith.addf %257, %258 : vector<16x32xf32>
    %c1_76 = arith.constant 1 : index
    %c64_77 = arith.constant 64 : index
    %c0_78 = arith.constant 0 : index
    %260 = vector.load %arg3[%c1_76, %c64_77, %c0_78] : memref<2x168x128xf32, #tpu.memory_space<vmem>>, vector<1x32x64xf32>
    %261 = vector.shape_cast %260 : vector<1x32x64xf32> to vector<32x64xf32>
    %c1_79 = arith.constant 1 : index
    %c164_80 = arith.constant 164 : index
    %c0_81 = arith.constant 0 : index
    %262 = vector.load %arg3[%c1_79, %c164_80, %c0_81] : memref<2x168x128xf32, #tpu.memory_space<vmem>>, vector<1x1x64xf32>
    %263 = vector.shape_cast %262 : vector<1x1x64xf32> to vector<1x64xf32>
    %c1_82 = arith.constant 1 : index
    %c96_83 = arith.constant 96 : index
    %c0_84 = arith.constant 0 : index
    %264 = vector.load %arg3[%c1_82, %c96_83, %c0_84] : memref<2x168x128xf32, #tpu.memory_space<vmem>>, vector<1x64x32xf32>
    %265 = vector.shape_cast %264 : vector<1x64x32xf32> to vector<64x32xf32>
    %c1_85 = arith.constant 1 : index
    %c165_86 = arith.constant 165 : index
    %c0_87 = arith.constant 0 : index
    %266 = vector.load %arg3[%c1_85, %c165_86, %c0_87] : memref<2x168x128xf32, #tpu.memory_space<vmem>>, vector<1x1x32xf32>
    %267 = vector.shape_cast %266 : vector<1x1x32xf32> to vector<1x32xf32>
    %cst_88 = arith.constant dense<0.000000e+00> : vector<16x64xf32>
    %268 = tpu.matmul %259, %261, %cst_88 {dimension_numbers = #tpu.dot_dimension_numbers<[1], [0], [0], [1], [0, 0, 1, 1], [], []>} : vector<16x32xf32>, vector<32x64xf32>, vector<16x64xf32> -> vector<16x64xf32>
    %269 = vector.broadcast %263 : vector<1x64xf32> to vector<16x64xf32>
    %270 = arith.addf %268, %269 : vector<16x64xf32>
    %cst_89 = arith.constant 0.000000e+00 : f32
    %271 = vector.broadcast %cst_89 : f32 to vector<16x64xf32>
    %272 = arith.maximumf %270, %271 : vector<16x64xf32>
    %cst_90 = arith.constant dense<0.000000e+00> : vector<16x32xf32>
    %273 = tpu.matmul %272, %265, %cst_90 {dimension_numbers = #tpu.dot_dimension_numbers<[1], [0], [0], [1], [0, 0, 1, 1], [], []>} : vector<16x64xf32>, vector<64x32xf32>, vector<16x32xf32> -> vector<16x32xf32>
    %274 = vector.broadcast %267 : vector<1x32xf32> to vector<16x32xf32>
    %275 = arith.addf %273, %274 : vector<16x32xf32>
    %c1_91 = arith.constant 1 : index
    %c166_92 = arith.constant 166 : index
    %c0_93 = arith.constant 0 : index
    %276 = vector.load %arg3[%c1_91, %c166_92, %c0_93] : memref<2x168x128xf32, #tpu.memory_space<vmem>>, vector<1x1x32xf32>
    %277 = vector.shape_cast %276 : vector<1x1x32xf32> to vector<1x32xf32>
    %c1_94 = arith.constant 1 : index
    %c167_95 = arith.constant 167 : index
    %c0_96 = arith.constant 0 : index
    %278 = vector.load %arg3[%c1_94, %c167_95, %c0_96] : memref<2x168x128xf32, #tpu.memory_space<vmem>>, vector<1x1x32xf32>
    %279 = vector.shape_cast %278 : vector<1x1x32xf32> to vector<1x32xf32>
    %280 = arith.addf %259, %275 : vector<16x32xf32>
    %cst_97 = arith.constant dense<0.000000e+00> : vector<16xf32>
    %281 = vector.multi_reduction <add>, %280, %cst_97 [1] : vector<16x32xf32> to vector<16xf32>
    %282 = vector.shape_cast %281 : vector<16xf32> to vector<16x1xf32>
    %cst_98 = arith.constant 3.200000e+01 : f32
    %283 = vector.broadcast %cst_98 : f32 to vector<16x1xf32>
    %284 = arith.divf %282, %283 : vector<16x1xf32>
    %285 = vector.broadcast %284 : vector<16x1xf32> to vector<16x32xf32>
    %286 = arith.subf %280, %285 : vector<16x32xf32>
    %287 = arith.mulf %286, %286 : vector<16x32xf32>
    %cst_99 = arith.constant dense<0.000000e+00> : vector<16xf32>
    %288 = vector.multi_reduction <add>, %287, %cst_99 [1] : vector<16x32xf32> to vector<16xf32>
    %289 = vector.shape_cast %288 : vector<16xf32> to vector<16x1xf32>
    %cst_100 = arith.constant 3.200000e+01 : f32
    %290 = vector.broadcast %cst_100 : f32 to vector<16x1xf32>
    %291 = arith.divf %289, %290 : vector<16x1xf32>
    %292 = vector.broadcast %284 : vector<16x1xf32> to vector<16x32xf32>
    %293 = arith.subf %280, %292 : vector<16x32xf32>
    %cst_101 = arith.constant 9.99999974E-6 : f32
    %294 = vector.broadcast %cst_101 : f32 to vector<16x1xf32>
    %295 = arith.addf %291, %294 : vector<16x1xf32>
    %296 = math.rsqrt %295 : vector<16x1xf32>
    %297 = vector.broadcast %296 : vector<16x1xf32> to vector<16x32xf32>
    %298 = arith.mulf %293, %297 : vector<16x32xf32>
    %299 = vector.broadcast %277 : vector<1x32xf32> to vector<16x32xf32>
    %300 = arith.mulf %298, %299 : vector<16x32xf32>
    %301 = vector.broadcast %279 : vector<1x32xf32> to vector<16x32xf32>
    %302 = arith.addf %300, %301 : vector<16x32xf32>
    %c0_102 = arith.constant 0 : index
    %c0_103 = arith.constant 0 : index
    %303 = vector.load %arg4[%c0_102, %c0_103] : memref<16x32xf32, #tpu.memory_space<vmem>>, vector<16x32xf32>
    tpu.vector_store %arg4[%c0_102, %c0_103], %302 {strides = array<i32>} : memref<16x32xf32, #tpu.memory_space<vmem>>, vector<16x32xf32>,
    return
  }
  func.func @transform_0(%arg0: i32) -> (i32, i32) {
    %c0_i32 = arith.constant 0 : i32
    %c0_i32_0 = arith.constant 0 : i32
    %c0_i32_1 = arith.constant 0 : i32
    return %c0_i32, %c0_i32_0 : i32, i32
  }
  func.func @transform_1(%arg0: i32) -> (i32, i32) {
    %c0_i32 = arith.constant 0 : i32
    %c0_i32_0 = arith.constant 0 : i32
    %c0_i32_1 = arith.constant 0 : i32
    return %c0_i32, %c0_i32_0 : i32, i32
  }
  func.func @transform_2(%arg0: i32) -> (i32, i32, i32) {
    %c0_i32 = arith.constant 0 : i32
    %c0_i32_0 = arith.constant 0 : i32
    %c0_i32_1 = arith.constant 0 : i32
    %c0_i32_2 = arith.constant 0 : i32
    return %c0_i32, %c0_i32_0, %c0_i32_1 : i32, i32, i32
  }
  func.func @transform_3(%arg0: i32) -> (i32, i32) {
    %c0_i32 = arith.constant 0 : i32
    %c0_i32_0 = arith.constant 0 : i32
    %c0_i32_1 = arith.constant 0 : i32
    return %c0_i32, %c0_i32_0 : i32, i32
  }
}

</mosaic_0001>

<bundles_post_ra>
// kernel: tpu_custom_call.1
= control target key start
LH: loop header
LB: loop body
LE: loop exit
PB: predicated region body
PF: predicated region fallthrough
CT: control target
= control target key end

     0   :  { %8 = vsyncpa [#allocation3], 0  ;;  %s2550_s0 = inlined_call_operand.hbm [shape: f32[16,32], index: 0, kind: input, shape index: {}]   ;;  %s2551_s1 = inlined_call_operand.hbm [shape: f32[16,32], index: 1, kind: input, shape index: {}]   ;;  %s2552_s2 = inlined_call_operand.hbm [shape: f32[2,168,128], index: 2, kind: input, shape index: {}]   ;;  %s2553_s3 = inlined_call_operand.hbm [shape: f32[16,32], index: 3, kind: output, shape index: {}]  }
   0x1   :  { %9 = vsyncpa [#allocation6], 0 }
   0x2   :  { %10 = vsyncpa [#allocation4], 0  ;;  %s28_s14 = sshll.u32 %s2551_s1, 4  ;;  %s2169_s15 = smov [#allocation5]   ;;  %s29_s14 = int_to_ptr.hbm [resolvable:$true] %s28_s14 }
   0x3   :  { %s30_s16 = sshll.u32 %s2169_s15, 4  ;;  %s15_s19 = sshll.u32 %s2550_s0, 4  ;;  %s31_s16 = int_to_ptr.vmem [resolvable:$true] %s30_s16  ;;  %s16_s19 = int_to_ptr.hbm [resolvable:$true] %s15_s19 }
   0x4   :  { %s2170_s20 = smov 128   ;;  %s2171_s21 = smov 8  }
   0x5   :  { %36 = dma.hbm_to_vmem [thread:$0]  %s29_s14, 256, %s31_s16, [#allocation6], %s2170_s20, %s2170_s20, %s2171_s21  }
   0x6   :  { %s2172_s22 = smov [#allocation2]   ;;  %s41_s1 = sshll.u32 %s2552_s2, 4  ;;  %s42_s1 = int_to_ptr.hbm [resolvable:$true] %s41_s1 }
   0x7   :  { %s17_s23 = sshll.u32 %s2172_s22, 4  ;;  %s2173_s0 = smov [#allocation7]   ;;  %s18_s23 = int_to_ptr.vmem [resolvable:$true] %s17_s23 }
   0x8   :  { %23 = dma.hbm_to_vmem [thread:$0]  %s16_s19, 256, %s18_s23, [#allocation3], %s2170_s20, %s2170_s20, %s2171_s21  }
   0x9   :  { %s43_s26 = sshll.u32 %s2173_s0, 4  ;;  %s44_s26 = int_to_ptr.vmem [resolvable:$true] %s43_s26 }
   0xa   :  { %49 = dma.hbm_to_vmem [thread:$0]  %s42_s1, 5376, %s44_s26, [#allocation6], %s2170_s20, %s2170_s20, %s2171_s21  }
   0xb   :  { %2163 = dma.done.wait [#allocation3], 256  }
   0xc   :  { %2164 = vsyncadd [#allocation3], 4294967040 }
   0xd   :  { %2165 = dma.done.wait [#allocation6], 5632  }
   0xe   :  { %2166 = vsyncadd [#allocation6], 4294961664  ;;  %v71_v0 = vld [vmem:[#allocation7 + $0x18] sm:$0xff]  ;;  %v70_v1 = vld [vmem:[#allocation7 + $0x10] sm:$0xff]  ;;  %vm74_vm0 = vcmask 261120   ;;  %s2174_s2 = smov 104  }
   0xf   :  { %93 = vmatpush.msra.mxu0 %v71_v0  ;;  %v62_v2 = vld [vmem:[#allocation2] sm:$0xff]  ;;  %v64_v3 = vld [vmem:[#allocation5] sm:$0xff]  ;;  %v69_v4 = vld [vmem:[#allocation7 + $0x8] sm:$0xff]  ;;  %s2175_s27 = smov 120   ;;  %s2176_s28 = smov 112   ;;  %vm120_vm1 = vcmask 64512  }
  0x10   :  { %v68_v5 = vld [vmem:[#allocation7] sm:$0xff]  ;;  %v2219_v6 = vadd.f32 %v64_v3, %v62_v2  ;;  %v63_v7 = vld [vmem:[#allocation2 + $0x8] sm:$0xff]  ;;  %v65_v8 = vld [vmem:[#allocation5 + $0x8] sm:$0xff]  ;;  %s2177_s29 = smov 96   ;;  %s2178_s30 = smov 64   ;;  %vm869_vm9 = vcmask 523264  }
  0x11   :  { %94 = vmatpush.msra.mxu0 %v70_v1  ;;  %v2223_v9 = vadd.f32 %v65_v8, %v63_v7  ;;  %v1969_v10 = vld [vmem:[#allocation7 + $0xa0] ss:$0 sm:$0xff]  ;;  %s2180_s4 = smov [#allocation8]   ;;  %s1837_s8 = sshll.u32 %s2553_s3, 4  ;;  %s1838_s8 = int_to_ptr.hbm [resolvable:$true] %s1837_s8 }
  0x12   :  { %s1835_s5 = sshll.u32 %s2180_s4, 4  ;;  %s1836_s5 = int_to_ptr.vmem [resolvable:$true] %s1835_s5 }
  0x13   :  { %95 = vmatpush.msra.mxu0 %v69_v4 }
  0x15   :  { %96 = vmatpush.msra.mxu0 %v68_v5 }
  0x16   :  { %1851 = vmatmul.msk.f32.vlgmr.msra.gmra.mxu0 %vm74_vm0, %v2219_v6 }
  0x1e   :  { %1852 = vmatmul.msk.f32.gmra.mxu0 %vm74_vm0, %v2223_v9 }
  0x93   :  { %v98_v11 = vpop.f32.mrf.mxu0 }
  0x94   :  { %v2227_v12 = vadd.f32 %v1969_v10, %v98_v11 }
  0x96   :  { %114 = vrot.lane.b32.xlu2 %v2227_v12, %s2174_s2  ;;  %105 = vrot.lane.b32.xlu0 %v2227_v12, %s2175_s27 }
  0x9b   :  { %v101_v13 = vpop.f32.mrf.mxu0 }
  0x9c   :  { %v2233_v14 = vadd.f32 %v1969_v10, %v101_v13 }
  0x9e   :  { %108 = vrot.lane.b32.xlu1 %v2233_v14, %s2175_s27  ;;  %112 = vrot.lane.b32.xlu2 %v2233_v14, %s2176_s28 }
  0x9f   :  { %110 = vrot.lane.b32.xlu0 %v2227_v12, %s2176_s28 }
  0xa6   :  { %116 = vrot.lane.b32.xlu1 %v2233_v14, %s2174_s2 }
  0xa7   :  { %118 = vrot.lane.b32.xlu0 %v2227_v12, %s2177_s29 }
  0xf0   :  { %v2257_v18 = vpop.permute.xlu2 %114 }
  0xf8   :  { %v2270_v21 = vpop.permute.xlu2 %112 }
 0x108   :  { %v2245_v15 = vpop.permute.xlu0 %105 }
 0x109   :  { %171 = vrot.lane.b32.xlu1 %v2245_v15, %s2177_s29  ;;  %v1939_v8 = vpack.i.bf16 %v2245_v15, %v2227_v12 }
 0x110   :  { %v2249_v16 = vpop.permute.xlu1 %108 }
 0x111   :  { %v2251_v17 = vpop.permute.xlu0 %110  ;;  %197 = vrot.lane.b32.xlu0 %v2249_v16, %s2177_s29 }
 0x112   :  { %223 = vrot.lane.b32.xlu2 %v2251_v17, %s2177_s29  ;;  %v1944_v50 = vpack.i.bf16 %v2251_v17, %v2249_v16 }
 0x118   :  { %v2259_v19 = vpop.permute.xlu1 %116 }
 0x119   :  { %v119_v20 = vpop.permute.xlu0 %118  ;;  %145 = vrot.lane.b32.xlu0 %v2233_v14, %s2177_s29  ;;  %301 = vrot.lane.b32.xlu1 %v2259_v19, %s2177_s29  ;;  %v1949_v11 = vpack.i.bf16 %v2259_v19, %v2257_v18 }
 0x11a   :  { %275 = vrot.lane.b32.xlu2 %v2257_v18, %s2177_s29  ;;  %1853 = vmatpush.xpose.msk.msra.mxu3 %vm120_vm1, %v119_v20 }
 0x11d   :  { %1854 = vmatmul.msk.f32.vlgmr.msra.gmra.mxu3 %vm120_vm1, %v2227_v12 }
 0x121   :  { %249 = vrot.lane.b32.xlu1 %v2270_v21, %s2177_s29 }
 0x16c   :  { %v224_v22 = vpop.permute.xlu2 %223 }
 0x16d   :  { %1861 = vmatpush.xpose.msk.msra.mxu2 %vm120_vm1, %v224_v22 }
 0x170   :  { %1862 = vmatmul.msk.f32.vlgmr.msra.gmra.mxu2 %vm120_vm1, %v2251_v17 }
 0x174   :  { %v276_v25 = vpop.permute.xlu2 %275 }
 0x17b   :  { %v172_v23 = vpop.permute.xlu1 %171 }
 0x17c   :  { %1857 = vmatpush.xpose.msk.msrb.mxu3 %vm120_vm1, %v172_v23 }
 0x17f   :  { %1858 = vmatmul.msk.f32.vlgmr.msrb.gmra.mxu3 %vm120_vm1, %v2245_v15 }
 0x183   :  { %v198_v24 = vpop.permute.xlu0 %197 }
 0x184   :  { %1859 = vmatpush.xpose.msk.msra.mxu1 %vm120_vm1, %v198_v24 }
 0x187   :  { %1860 = vmatmul.msk.f32.vlgmr.msra.gmra.mxu1 %vm120_vm1, %v2249_v16 }
 0x188   :  { %1865 = vmatpush.xpose.msk.msrb.mxu1 %vm120_vm1, %v276_v25 }
 0x18b   :  { %v302_v26 = vpop.permute.xlu1 %301  ;;  %v146_v27 = vpop.permute.xlu0 %145 }
 0x18c   :  { %1855 = vmatpush.xpose.msk.msrb.mxu0 %vm120_vm1, %v146_v27  ;;  %1867 = vmatpush.xpose.msk.msrb.mxu2 %vm120_vm1, %v302_v26 }
 0x18f   :  { %1856 = vmatmul.msk.f32.vlgmr.msrb.gmra.mxu0 %vm120_vm1, %v2233_v14  ;;  %1866 = vmatmul.msk.f32.vlgmr.msrb.gmra.mxu1 %vm120_vm1, %v2257_v18 }
 0x190   :  { %1868 = vmatmul.msk.f32.vlgmr.msrb.gmra.mxu2 %vm120_vm1, %v2259_v19 }
 0x193   :  { %v250_v28 = vpop.permute.xlu1 %249 }
 0x194   :  { %1863 = vmatpush.xpose.msk.msra.mxu3 %vm120_vm1, %v250_v28 }
 0x197   :  { %1864 = vmatmul.msk.f32.vlgmr.msra.gmra.mxu3 %vm120_vm1, %v2270_v21 }
 0x1a0   :  { %v142_v29 = vpop.f32.mrf.mxu3 }
 0x1a1   :  { %v327_v30 = vsel %vm120_vm1, %v142_v29, -inf }
 0x1a2   :  { %328 = vmax.xlane.f32.xlu2 %v327_v30 }
 0x1f3   :  { %v2296_v31 = vpop.f32.mrf.mxu2 }
 0x1f4   :  { %v339_v32 = vsel %vm120_vm1, %v2296_v31, -inf }
 0x1f5   :  { %340 = vmax.xlane.f32.xlu2 %v339_v32 }
 0x202   :  { %v194_v33 = vpop.f32.mrf.mxu3 }
 0x203   :  { %v333_v34 = vsel %vm120_vm1, %v194_v33, -inf }
 0x204   :  { %334 = vmax.xlane.f32.xlu0 %v333_v34  ;;  %v220_v37 = vpop.f32.mrf.mxu1 }
 0x205   :  { %v336_v41 = vsel %vm120_vm1, %v220_v37, -inf }
 0x20c   :  { %v168_v35 = vpop.f32.mrf.mxu0  ;;  %v298_v47 = vpop.f32.mrf.mxu1 }
 0x20d   :  { %v330_v36 = vsel %vm120_vm1, %v168_v35, -inf  ;;  %v345_v49 = vsel %vm120_vm1, %v298_v47, -inf }
 0x20e   :  { %331 = vmax.xlane.f32.xlu1 %v330_v36 }
 0x213   :  { %v2302_v38 = vpop.f32.mrf.mxu2 }
 0x214   :  { %v348_v39 = vsel %vm120_vm1, %v2302_v38, -inf }
 0x215   :  { %v329_v40 = vpop.xlane.xlu2 %328  ;;  %349 = vmax.xlane.f32.xlu0 %v348_v39 }
 0x216   :  { %v351_v42 = vsub.f32 %v142_v29, %v329_v40  ;;  %337 = vmax.xlane.f32.xlu1 %v336_v41 }
 0x218   :  { %v359_v43 = vmul.f32 1.442695, %v351_v42 }
 0x21a   :  { %1985 = vpow2.f32 %v359_v43  ;;  %v272_v44 = vpop.f32.mrf.mxu3 }
 0x21b   :  { %v342_v45 = vsel %vm120_vm1, %v272_v44, -inf }
 0x21c   :  { %343 = vmax.xlane.f32.xlu2 %v342_v45 }
 0x220   :  { %v2308_v46 = vpop.eup %1985 }
 0x221   :  { %v375_v48 = vsel %vm120_vm1, %v2308_v46, 0.0 }
 0x222   :  { %376 = vadd.xlane.f32.xlu0 %v375_v48 }
 0x224   :  { %346 = vmax.xlane.f32.xlu2 %v345_v49 }
 0x23c   :  { %1945 = vrot.lane.b32.xlu2 %v1944_v50, %s2178_s30 }
 0x268   :  { %v341_v59 = vpop.xlane.xlu2 %340 }
 0x269   :  { %v355_v23 = vsub.f32 %v2296_v31, %v341_v59 }
 0x26b   :  { %v367_v12 = vmul.f32 1.442695, %v355_v23 }
 0x277   :  { %v335_v51 = vpop.xlane.xlu0 %334 }
 0x278   :  { %v353_v52 = vsub.f32 %v194_v33, %v335_v51 }
 0x27a   :  { %v363_v53 = vmul.f32 1.442695, %v353_v52 }
 0x27c   :  { %1987 = vpow2.f32 %v363_v53 }
 0x281   :  { %v332_v54 = vpop.xlane.xlu1 %331 }
 0x282   :  { %v2316_v55 = vpop.eup %1987  ;;  %v352_v56 = vsub.f32 %v168_v35, %v332_v54 }
 0x283   :  { %v381_v57 = vsel %vm120_vm1, %v2316_v55, 0.0 }
 0x284   :  { %v361_v58 = vmul.f32 1.442695, %v352_v56  ;;  %382 = vadd.xlane.f32.xlu1 %v381_v57 }
 0x286   :  { %1989 = vpow2.f32 %v361_v58 }
 0x288   :  { %v350_v15 = vpop.xlane.xlu0 %349 }
 0x289   :  { %v338_v60 = vpop.xlane.xlu1 %337  ;;  %v358_v18 = vsub.f32 %v2302_v38, %v350_v15 }
 0x28a   :  { %v354_v61 = vsub.f32 %v220_v37, %v338_v60 }
 0x28b   :  { %v373_v24 = vmul.f32 1.442695, %v358_v18  ;;  %v1970_v18 = vld [vmem:[#allocation7 + $0xa1] ss:$0 sm:$0xff] }
 0x28c   :  { %v2320_v62 = vpop.eup %1989  ;;  %v365_v63 = vmul.f32 1.442695, %v354_v61  ;;  %v624_v61 = vld [vmem:[#allocation7 + $0x28] sm:$0xff] }
 0x28d   :  { %v378_v0 = vsel %vm120_vm1, %v2320_v62, 0.0 }
 0x28e   :  { %1991 = vpow2.f32 %v365_v63  ;;  %379 = vadd.xlane.f32.xlu0 %v378_v0  ;;  %v626_v63 = vld [vmem:[#allocation7 + $0x38] sm:$0xff] }
 0x28f   :  { %v344_v1 = vpop.xlane.xlu2 %343 }
 0x290   :  { %v356_v20 = vsub.f32 %v272_v44, %v344_v1 }
 0x292   :  { %v369_v22 = vmul.f32 1.442695, %v356_v20 }
 0x294   :  { %v1992_v2 = vpop.eup %1991 }
 0x295   :  { %v384_v3 = vsel %vm120_vm1, %v1992_v2, 0.0  ;;  %v377_v29 = vpop.xlane.xlu0 %376 }
 0x296   :  { %385 = vadd.xlane.f32.xlu2 %v384_v3 }
 0x297   :  { %v347_v4 = vpop.xlane.xlu2 %346 }
 0x298   :  { %v357_v5 = vsub.f32 %v298_v47, %v347_v4 }
 0x29a   :  { %v371_v7 = vmul.f32 1.442695, %v357_v5  ;;  %v625_v5 = vld [vmem:[#allocation7 + $0x30] sm:$0xff] }
 0x29c   :  { %1993 = vpow2.f32 %v371_v7 }
 0x29d   :  { %1940 = vrot.lane.b32.xlu1 %v1939_v8, %s2178_s30  ;;  %1995 = vpow2.f32 %v369_v22 }
 0x29e   :  { %1997 = vpow2.f32 %v367_v12 }
 0x29f   :  { %v1946_v10 = vpop.permute.xlu2 %1945  ;;  %1999 = vpow2.f32 %v373_v24 }
 0x2a0   :  { %v1947_v13 = vunpack.i.l.bf16 %v1946_v10  ;;  %2001 = vrcp.f32 %v377_v29  ;;  %v1948_v42 = vunpack.i.h.bf16 %v1946_v10 }
 0x2a2   :  { %v1994_v16 = vpop.eup %1993  ;;  %514 = vmatpush.msra.mxu2 %v1947_v13  ;;  %1950 = vrot.lane.b32.xlu0 %v1949_v11, %s2178_s30 }
 0x2a3   :  { %v393_v17 = vsel %vm120_vm1, %v1994_v16, 0.0  ;;  %v2336_v19 = vpop.eup %1995 }
 0x2a4   :  { %394 = vadd.xlane.f32.xlu2 %v393_v17  ;;  %v390_v25 = vsel %vm120_vm1, %v2336_v19, 0.0  ;;  %v1998_v26 = vpop.eup %1997 }
 0x2a5   :  { %v387_v27 = vsel %vm120_vm1, %v1998_v26, 0.0  ;;  %v2000_v28 = vpop.eup %1999 }
 0x2a6   :  { %v2002_v33 = vpop.eup %2001 }
 0x2a7   :  { %v407_v39 = vmul.f32 %v2002_v33, %v2308_v46 }
 0x2bc   :  { %441 = vrot.lane.b32.xlu2 %v2233_v14, %s2178_s30  ;;  %v396_v14 = vsel %vm120_vm1, %v2000_v28, 0.0 }
 0x2c7   :  { %391 = vadd.xlane.f32.xlu1 %v390_v25 }
 0x2cc   :  { %388 = vadd.xlane.f32.xlu0 %v387_v27 }
 0x2d4   :  { %397 = vadd.xlane.f32.xlu0 %v396_v14 }
 0x2e8   :  { %545 = vrot.lane.b32.xlu0 %v2270_v21, %s2178_s30 }
 0x2f7   :  { %v383_v30 = vpop.xlane.xlu1 %382 }
 0x2f8   :  { %2003 = vrcp.f32 %v383_v30 }
 0x2fe   :  { %v2004_v34 = vpop.eup %2003 }
 0x2ff   :  { %v409_v40 = vmul.f32 %v2004_v34, %v2316_v55 }
 0x301   :  { %v380_v32 = vpop.xlane.xlu0 %379 }
 0x309   :  { %v386_v31 = vpop.xlane.xlu2 %385 }
 0x30a   :  { %2005 = vrcp.f32 %v386_v31 }
 0x30b   :  { %2007 = vrcp.f32 %v380_v32 }
 0x30f   :  { %v1941_v35 = vpop.permute.xlu1 %1940 }
 0x310   :  { %v2006_v36 = vpop.eup %2005  ;;  %v1943_v37 = vunpack.i.h.bf16 %v1941_v35  ;;  %v1942_v38 = vunpack.i.l.bf16 %v1941_v35 }
 0x311   :  { %v410_v41 = vmul.f32 %v2006_v36, %v1992_v2  ;;  %v2008_v46 = vpop.eup %2007 }
 0x312   :  { %436 = vmatpush.msrb.mxu3 %v1942_v38  ;;  %488 = vmatpush.msra.mxu1 %v1943_v37  ;;  %v408_v48 = vmul.f32 %v2008_v46, %v2320_v62  ;;  %v623_v62 = vld [vmem:[#allocation7 + $0x20] sm:$0xff] }
 0x313   :  { %1869 = vmatmul.msk.f32.vlgmr.msrb.gmra.mxu3 %vm120_vm1, %v407_v39  ;;  %1871 = vmatmul.msk.f32.vlgmr.msra.gmra.mxu1 %vm120_vm1, %v409_v40  ;;  %v2179_v40 = vmov 32.0  }
 0x314   :  { %1872 = vmatmul.msk.f32.vlgmr.msra.gmra.mxu2 %vm120_vm1, %v410_v41  ;;  %540 = vmatpush.msra.mxu3 %v1948_v42  ;;  %v1951_v21 = vpop.permute.xlu0 %1950 }
 0x315   :  { %v1953_v43 = vunpack.i.h.bf16 %v1951_v21  ;;  %v1952_v44 = vunpack.i.l.bf16 %v1951_v21 }
 0x316   :  { %649 = vmatpush.msrb.mxu3 %v623_v62  ;;  %v834_v62 = vld [vmem:[#allocation7 + $0x98] sm:$0xff] }
 0x317   :  { %v395_v45 = vpop.xlane.xlu2 %394  ;;  %592 = vmatpush.msrb.mxu1 %v1952_v44  ;;  %618 = vmatpush.msrb.mxu2 %v1953_v43 }
 0x318   :  { %2009 = vrcp.f32 %v395_v45 }
 0x319   :  { %736 = vmatpush.msra.mxu2 %v626_v63  ;;  %707 = vmatpush.msra.mxu1 %v625_v5  ;;  %v833_v63 = vld [vmem:[#allocation7 + $0x90] sm:$0xff] }
 0x31e   :  { %v2010_v47 = vpop.eup %2009 }
 0x31f   :  { %v413_v49 = vmul.f32 %v2010_v47, %v1994_v16  ;;  %v442_v50 = vpop.permute.xlu2 %441 }
 0x320   :  { %462 = vmatpush.msra.mxu0 %v442_v50 }
 0x321   :  { %1870 = vmatmul.msk.f32.vlgmr.msra.gmra.mxu0 %vm120_vm1, %v408_v48  ;;  %1875 = vmatmul.msk.f32.vlgmr.msrb.gmra.mxu1 %vm120_vm1, %v413_v49 }
 0x33a   :  { %v392_v56 = vpop.xlane.xlu1 %391 }
 0x33f   :  { %v389_v51 = vpop.xlane.xlu0 %388 }
 0x340   :  { %2011 = vrcp.f32 %v389_v51 }
 0x346   :  { %v2012_v52 = vpop.eup %2011 }
 0x347   :  { %v411_v53 = vmul.f32 %v2012_v52, %v1998_v26  ;;  %v398_v54 = vpop.xlane.xlu0 %397 }
 0x348   :  { %2013 = vrcp.f32 %v398_v54 }
 0x349   :  { %1873 = vmatmul.msk.f32.vlgmr.msra.gmra.mxu3 %vm120_vm1, %v411_v53  ;;  %2015 = vrcp.f32 %v392_v56  ;;  %v824_v56 = vld [vmem:[#allocation7 + $0x50] sm:$0xff] }
 0x34a   :  { %2017 = vrcp.f32 %v2179_v40  ;;  %v1974_v40 = vld [vmem:[#allocation7 + $0xa5] ss:$0 sm:$0xff] }
 0x34e   :  { %v2014_v55 = vpop.eup %2013 }
 0x34f   :  { %v414_v57 = vmul.f32 %v2014_v55, %v2000_v28  ;;  %v2016_v58 = vpop.eup %2015  ;;  %v825_v55 = vld [vmem:[#allocation7 + $0x58] sm:$0xff] }
 0x350   :  { %v412_v59 = vmul.f32 %v2016_v58, %v2336_v19  ;;  %v2018_v41 = vpop.eup %2017  ;;  %855 = vmatpush.msra.mxu3 %v825_v55  ;;  %v822_v58 = vld [vmem:[#allocation7 + $0x40] sm:$0xff] }
 0x351   :  { %1876 = vmatmul.msk.f32.vlgmr.msrb.gmra.mxu2 %vm120_vm1, %v414_v57  ;;  %v772_v42 = vmul.f32 32.0, %v2018_v41  ;;  %vm776_vm2 = vweird.f32 %v2018_v41  ;;  %v823_v57 = vld [vmem:[#allocation7 + $0x48] sm:$0xff] }
 0x352   :  { %856 = vmatpush.msra.mxu3 %v824_v56 }
 0x353   :  { %v773_v21 = vsub.f32 1.0, %v772_v42 }
 0x354   :  { %857 = vmatpush.msra.mxu3 %v823_v57 }
 0x355   :  { %v774_v43 = vmul.f32 %v2018_v41, %v773_v21 }
 0x356   :  { %858 = vmatpush.msra.mxu3 %v822_v58  ;;  %v957_v58 = vld [vmem:[#allocation7 + $0xc0] sm:$0xff] }
 0x357   :  { %v775_v44 = vadd.f32 %v2018_v41, %v774_v43  ;;  %978 = vmatpush.msrb.mxu1 %v957_v58 }
 0x359   :  { %v2376_v45 = vsel %vm776_vm2, %v2018_v41, %v775_v44 }
 0x35a   :  { %v546_v60 = vpop.permute.xlu0 %545 }
 0x35b   :  { %566 = vmatpush.msrb.mxu0 %v546_v60 }
 0x35c   :  { %1874 = vmatmul.msk.f32.vlgmr.msrb.gmra.mxu0 %vm120_vm1, %v412_v59 }
 0x35d   :  { %678 = vmatpush.msra.mxu0 %v624_v61 }
 0x35f   :  { %884 = vmatpush.msrb.mxu0 %v834_v62 }
 0x361   :  { %885 = vmatpush.msrb.mxu0 %v833_v63 }
 0x390   :  { %v490_v0 = vpop.f32.mrf.mxu1 }
 0x391   :  { %1879 = vmatmul.msk.f32.vlgmr.msra.gmra.mxu0 %vm120_vm1, %v490_v0 }
 0x396   :  { %v438_v1 = vpop.f32.mrf.mxu3 }
 0x397   :  { %1877 = vmatmul.msk.f32.vlgmr.msrb.gmra.mxu3 %vm120_vm1, %v438_v1  ;;  %v516_v2 = vpop.f32.mrf.mxu2 }
 0x399   :  { %1880 = vmatmul.msk.f32.gmra.mxu0 %vm120_vm1, %v516_v2  ;;  %v832_v2 = vld [vmem:[#allocation7 + $0x88] sm:$0xff] }
 0x39a   :  { %886 = vmatpush.msrb.mxu0 %v832_v2 }
 0x39e   :  { %v464_v3 = vpop.f32.mrf.mxu0  ;;  %v594_v4 = vpop.f32.mrf.mxu1 }
 0x39f   :  { %1878 = vmatmul.msk.f32.gmra.mxu3 %vm120_vm1, %v464_v3  ;;  %1883 = vmatmul.msk.f32.vlgmr.msra.gmra.mxu2 %vm120_vm1, %v594_v4 }
 0x3cc   :  { %v542_v7 = vpop.f32.mrf.mxu3 }
 0x3cd   :  { %1881 = vmatmul.msk.f32.vlgmr.msra.gmra.mxu1 %vm120_vm1, %v542_v7  ;;  %v831_v7 = vld [vmem:[#allocation7 + $0x80] sm:$0xff] }
 0x3ce   :  { %887 = vmatpush.msrb.mxu0 %v831_v7 }
 0x3d4   :  { %v620_v8 = vpop.f32.mrf.mxu2 }
 0x3d5   :  { %1884 = vmatmul.msk.f32.gmra.mxu2 %vm120_vm1, %v620_v8 }
 0x3d9   :  { %v568_v10 = vpop.f32.mrf.mxu0 }
 0x3da   :  { %1882 = vmatmul.msk.f32.gmra.mxu1 %vm120_vm1, %v568_v10 }
 0x40e   :  { %v680_v13 = vpop.f32.mrf.mxu0 }
 0x40f   :  { %v745_v17 = vsel %vm74_vm0, %v680_v13, 0.0 }
 0x416   :  { %v683_v28 = vpop.f32.mrf.mxu0 }
 0x417   :  { %v752_v30 = vsel %vm74_vm0, %v683_v28, 0.0 }
 0x41a   :  { %v651_v11 = vpop.f32.mrf.mxu3 }
 0x41b   :  { %v744_v16 = vsel %vm74_vm0, %v651_v11, 0.0  ;;  %v830_v11 = vld [vmem:[#allocation7 + $0x78] sm:$0xff] }
 0x41c   :  { %v746_v20 = vadd.f32 %v745_v17, %v744_v16  ;;  %888 = vmatpush.msrb.mxu0 %v830_v11  ;;  %v1971_v17 = vld [vmem:[#allocation7 + $0xa2] ss:$0 sm:$0xff] }
 0x422   :  { %v738_v22 = vpop.f32.mrf.mxu2  ;;  %v654_v26 = vpop.f32.mrf.mxu3 }
 0x423   :  { %v749_v19 = vsel %vm74_vm0, %v738_v22, 0.0  ;;  %v751_v14 = vsel %vm74_vm0, %v654_v26, 0.0 }
 0x424   :  { %v753_v31 = vadd.f32 %v752_v30, %v751_v14 }
 0x44a   :  { %v709_v23 = vpop.f32.mrf.mxu1 }
 0x44b   :  { %v747_v12 = vsel %vm74_vm0, %v709_v23, 0.0  ;;  %v1972_v23 = vld [vmem:[#allocation7 + $0xa3] ss:$0 sm:$0xff] }
 0x44c   :  { %v748_v15 = vadd.f32 %v747_v12, %v746_v20 }
 0x44e   :  { %v750_v24 = vadd.f32 %v749_v19, %v748_v15 }
 0x450   :  { %v759_v25 = vadd.f32 %v1970_v18, %v750_v24 }
 0x452   :  { %v763_v27 = vadd.f32 %v759_v25, %v2219_v6 }
 0x454   :  { %v765_v29 = vsel %vm74_vm0, %v763_v27, 0.0 }
 0x455   :  { %766 = vadd.xlane.f32.xlu2 %v765_v29 }
 0x457   :  { %v712_v32 = vpop.f32.mrf.mxu1 }
 0x458   :  { %v754_v33 = vsel %vm74_vm0, %v712_v32, 0.0  ;;  %v741_v34 = vpop.f32.mrf.mxu2  ;;  %v828_v32 = vld [vmem:[#allocation7 + $0x68] sm:$0xff] }
 0x459   :  { %v755_v35 = vadd.f32 %v754_v33, %v753_v31  ;;  %v756_v36 = vsel %vm74_vm0, %v741_v34, 0.0  ;;  %v829_v31 = vld [vmem:[#allocation7 + $0x70] sm:$0xff]  ;;  %v827_v33 = vld [vmem:[#allocation7 + $0x60] sm:$0xff] }
 0x45a   :  { %889 = vmatpush.msrb.mxu0 %v829_v31  ;;  %v1973_v34 = vld [vmem:[#allocation7 + $0xa4] ss:$0 sm:$0xff] }
 0x45b   :  { %v757_v37 = vadd.f32 %v756_v36, %v755_v35 }
 0x45c   :  { %890 = vmatpush.msrb.mxu0 %v828_v32 }
 0x45d   :  { %v760_v38 = vadd.f32 %v1970_v18, %v757_v37 }
 0x45e   :  { %891 = vmatpush.msrb.mxu0 %v827_v33 }
 0x45f   :  { %v764_v6 = vadd.f32 %v760_v38, %v2223_v9 }
 0x461   :  { %v768_v39 = vsel %vm74_vm0, %v764_v6, 0.0 }
 0x462   :  { %769 = vadd.xlane.f32.xlu0 %v768_v39 }
 0x4c8   :  { %v767_v46 = vpop.xlane.xlu2 %766 }
 0x4c9   :  { %v778_v47 = vmul.f32 %v2376_v45, %v767_v46 }
 0x4cb   :  { %v780_v48 = vsub.f32 %v763_v27, %v778_v47 }
 0x4cd   :  { %v782_v49 = vmul.f32 %v780_v48, %v780_v48 }
 0x4cf   :  { %v784_v9 = vsel %vm74_vm0, %v782_v49, 0.0 }
 0x4d0   :  { %785 = vadd.xlane.f32.xlu1 %v784_v9 }
 0x4d5   :  { %v770_v50 = vpop.xlane.xlu0 %769 }
 0x4d6   :  { %v779_v51 = vmul.f32 %v2376_v45, %v770_v50 }
 0x4d8   :  { %v781_v52 = vsub.f32 %v764_v6, %v779_v51 }
 0x4da   :  { %v783_v53 = vmul.f32 %v781_v52, %v781_v52 }
 0x4dc   :  { %v787_v54 = vsel %vm74_vm0, %v783_v53, 0.0 }
 0x4dd   :  { %788 = vadd.xlane.f32.xlu1 %v787_v54 }
 0x543   :  { %v786_v59 = vpop.xlane.xlu1 %785 }
 0x544   :  { %v790_v60 = vmul.f32 %v786_v59, %v2376_v45  ;;  %v956_v59 = vld [vmem:[#allocation7 + $0xb8] sm:$0xff] }
 0x545   :  { %979 = vmatpush.msrb.mxu1 %v956_v59 }
 0x546   :  { %v792_v61 = vadd.f32 1e-05, %v790_v60  ;;  %v955_v60 = vld [vmem:[#allocation7 + $0xb0] sm:$0xff] }
 0x547   :  { %980 = vmatpush.msrb.mxu1 %v955_v60 }
 0x548   :  { %2019 = vrsqrt.f32 %v792_v61  ;;  %vm800_vm4 = vweird.f32 %v792_v61 }
 0x54e   :  { %v2020_v0 = vpop.eup %2019 }
 0x54f   :  { %v795_v1 = vmul.f32 %v2020_v0, %v792_v61  ;;  %vm801_vm3 = vweird.f32 %v2020_v0  ;;  %v954_v61 = vld [vmem:[#allocation7 + $0xa8] sm:$0xff] }
 0x550   :  { %v789_v3 = vpop.xlane.xlu1 %788  ;;  %vm802_vm5 = vmor %vm800_vm4, %vm801_vm3  ;;  %981 = vmatpush.msrb.mxu1 %v954_v61 }
 0x551   :  { %v796_v4 = vmul.f32 %v2020_v0, %v795_v1  ;;  %v791_v5 = vmul.f32 %v789_v3, %v2376_v45 }
 0x553   :  { %v797_v8 = vmul.f32 0.5, %v796_v4  ;;  %v793_v10 = vadd.f32 1e-05, %v791_v5 }
 0x555   :  { %v798_v13 = vsub.f32 1.5, %v797_v8  ;;  %2021 = vrsqrt.f32 %v793_v10  ;;  %vm810_vm7 = vweird.f32 %v793_v10 }
 0x557   :  { %v799_v16 = vmul.f32 %v2020_v0, %v798_v13  ;;  %v1975_v13 = vld [vmem:[#allocation7 + $0xa6] ss:$0 sm:$0xff] }
 0x559   :  { %v803_v20 = vsel %vm802_vm5, %v2020_v0, %v799_v16 }
 0x55a   :  { %v814_v22 = vmul.f32 %v803_v20, %v780_v48  ;;  %v1976_v20 = vld [vmem:[#allocation7 + $0xa7] ss:$0 sm:$0xff] }
 0x55b   :  { %v2022_v12 = vpop.eup %2021 }
 0x55c   :  { %v817_v15 = vmul.f32 %v1971_v17, %v814_v22  ;;  %v805_v18 = vmul.f32 %v2022_v12, %v793_v10  ;;  %vm811_vm6 = vweird.f32 %v2022_v12 }
 0x55d   :  { %vm812_vm8 = vmor %vm810_vm7, %vm811_vm6 }
 0x55e   :  { %v806_v19 = vmul.f32 %v2022_v12, %v805_v18  ;;  %v820_v24 = vadd.f32 %v1972_v23, %v817_v15 }
 0x560   :  { %v807_v25 = vmul.f32 0.5, %v806_v19  ;;  %1885 = vmatmul.msk.f32.vlgmr.msra.gmra.mxu3 %vm74_vm0, %v820_v24 }
 0x562   :  { %v808_v26 = vsub.f32 1.5, %v807_v25 }
 0x564   :  { %v809_v27 = vmul.f32 %v2022_v12, %v808_v26 }
 0x566   :  { %v813_v28 = vsel %vm812_vm8, %v2022_v12, %v809_v27 }
 0x567   :  { %v815_v14 = vmul.f32 %v813_v28, %v781_v52 }
 0x569   :  { %v818_v29 = vmul.f32 %v1971_v17, %v815_v14 }
 0x56b   :  { %v821_v30 = vadd.f32 %v1972_v23, %v818_v29  ;;  %v1977_v29 = vld [vmem:[#allocation7 + $0x148] ss:$0 sm:$0xff] }
 0x56d   :  { %1886 = vmatmul.msk.f32.gmra.mxu3 %vm74_vm0, %v821_v30 }
 0x5e3   :  { %v860_v35 = vpop.f32.mrf.mxu3 }
 0x5e4   :  { %v861_v36 = vadd.f32 %v1973_v34, %v860_v35 }
 0x5e6   :  { %v866_v37 = vmax.f32 %v861_v36, 0.0 }
 0x5e8   :  { %1887 = vmatmul.msk.f32.vlgmr.msrb.gmra.mxu0 %vm869_vm9, %v866_v37 }
 0x5f0   :  { %v863_v38 = vpop.f32.mrf.mxu3 }
 0x5f1   :  { %v864_v6 = vadd.f32 %v1973_v34, %v863_v38 }
 0x5f3   :  { %v867_v39 = vmax.f32 %v864_v6, 0.0 }
 0x5f5   :  { %1888 = vmatmul.msk.f32.gmra.mxu0 %vm869_vm9, %v867_v39 }
 0x665   :  { %v893_v41 = vpop.f32.mrf.mxu0 }
 0x666   :  { %v894_v42 = vadd.f32 %v1974_v40, %v893_v41 }
 0x668   :  { %v901_v21 = vadd.f32 %v894_v42, %v820_v24 }
 0x66a   :  { %v903_v43 = vsel %vm74_vm0, %v901_v21, 0.0 }
 0x66b   :  { %904 = vadd.xlane.f32.xlu1 %v903_v43 }
 0x672   :  { %v896_v44 = vpop.f32.mrf.mxu0 }
 0x673   :  { %v897_v46 = vadd.f32 %v1974_v40, %v896_v44 }
 0x675   :  { %v902_v47 = vadd.f32 %v897_v46, %v821_v30 }
 0x677   :  { %v906_v48 = vsel %vm74_vm0, %v902_v47, 0.0 }
 0x678   :  { %907 = vadd.xlane.f32.xlu2 %v906_v48 }
 0x6de   :  { %v905_v49 = vpop.xlane.xlu1 %904 }
 0x6df   :  { %v909_v9 = vmul.f32 %v905_v49, %v2376_v45 }
 0x6e1   :  { %v911_v50 = vsub.f32 %v901_v21, %v909_v9 }
 0x6e3   :  { %v913_v51 = vmul.f32 %v911_v50, %v911_v50 }
 0x6e5   :  { %v915_v52 = vsel %vm74_vm0, %v913_v51, 0.0 }
 0x6e6   :  { %916 = vadd.xlane.f32.xlu1 %v915_v52 }
 0x6eb   :  { %v908_v53 = vpop.xlane.xlu2 %907 }
 0x6ec   :  { %v910_v54 = vmul.f32 %v908_v53, %v2376_v45 }
 0x6ee   :  { %v912_v55 = vsub.f32 %v902_v47, %v910_v54 }
 0x6f0   :  { %v914_v56 = vmul.f32 %v912_v55, %v912_v55 }
 0x6f2   :  { %v918_v57 = vsel %vm74_vm0, %v914_v56, 0.0 }
 0x6f3   :  { %919 = vadd.xlane.f32.xlu0 %v918_v57 }
 0x759   :  { %v917_v62 = vpop.xlane.xlu1 %916 }
 0x75a   :  { %v921_v63 = vmul.f32 %v917_v62, %v2376_v45 }
 0x75c   :  { %v923_v0 = vadd.f32 1e-05, %v921_v63 }
 0x75e   :  { %2023 = vrsqrt.f32 %v923_v0  ;;  %vm931_vm11 = vweird.f32 %v923_v0 }
 0x764   :  { %v2024_v1 = vpop.eup %2023 }
 0x765   :  { %v926_v2 = vmul.f32 %v2024_v1, %v923_v0  ;;  %vm932_vm10 = vweird.f32 %v2024_v1 }
 0x766   :  { %v920_v3 = vpop.xlane.xlu0 %919  ;;  %vm933_vm12 = vmor %vm931_vm11, %vm932_vm10 }
 0x767   :  { %v927_v4 = vmul.f32 %v2024_v1, %v926_v2  ;;  %v922_v5 = vmul.f32 %v920_v3, %v2376_v45 }
 0x769   :  { %v928_v7 = vmul.f32 0.5, %v927_v4  ;;  %v924_v8 = vadd.f32 1e-05, %v922_v5 }
 0x76b   :  { %v929_v10 = vsub.f32 1.5, %v928_v7  ;;  %2025 = vrsqrt.f32 %v924_v8  ;;  %vm941_vm14 = vweird.f32 %v924_v8 }
 0x76d   :  { %v930_v11 = vmul.f32 %v2024_v1, %v929_v10 }
 0x76f   :  { %v934_v16 = vsel %vm933_vm12, %v2024_v1, %v930_v11 }
 0x770   :  { %v945_v17 = vmul.f32 %v934_v16, %v911_v50 }
 0x771   :  { %v2026_v22 = vpop.eup %2025 }
 0x772   :  { %v948_v23 = vmul.f32 %v1975_v13, %v945_v17  ;;  %v936_v12 = vmul.f32 %v2026_v22, %v924_v8  ;;  %vm942_vm13 = vweird.f32 %v2026_v22 }
 0x773   :  { %vm943_vm15 = vmor %vm941_vm14, %vm942_vm13 }
 0x774   :  { %v937_v15 = vmul.f32 %v2026_v22, %v936_v12  ;;  %v2396_v18 = vadd.f32 %v1976_v20, %v948_v23 }
 0x776   :  { %v938_v19 = vmul.f32 0.5, %v937_v15  ;;  %1889 = vmatmul.msk.f32.vlgmr.msrb.gmra.mxu1 %vm74_vm0, %v2396_v18 }
 0x778   :  { %v939_v24 = vsub.f32 1.5, %v938_v19 }
 0x77a   :  { %v940_v25 = vmul.f32 %v2026_v22, %v939_v24 }
 0x77c   :  { %v944_v26 = vsel %vm943_vm15, %v2026_v22, %v940_v25 }
 0x77d   :  { %v946_v27 = vmul.f32 %v944_v26, %v912_v55 }
 0x77f   :  { %v949_v28 = vmul.f32 %v1975_v13, %v946_v27 }
 0x781   :  { %v2400_v14 = vadd.f32 %v1976_v20, %v949_v28 }
 0x783   :  { %1890 = vmatmul.msk.f32.gmra.mxu1 %vm74_vm0, %v2400_v14 }
 0x7f3   :  { %v983_v30 = vpop.f32.mrf.mxu1 }
 0x7f4   :  { %v984_v31 = vadd.f32 %v1977_v29, %v983_v30 }
 0x7f6   :  { %999 = vrot.lane.b32.xlu0 %v984_v31, %s2174_s2  ;;  %990 = vrot.lane.b32.xlu2 %v984_v31, %s2175_s27 }
 0x7fe   :  { %995 = vrot.lane.b32.xlu2 %v984_v31, %s2176_s28 }
 0x800   :  { %v986_v32 = vpop.f32.mrf.mxu1 }
 0x801   :  { %v2407_v33 = vadd.f32 %v1977_v29, %v986_v32 }
 0x803   :  { %997 = vrot.lane.b32.xlu1 %v2407_v33, %s2176_s28  ;;  %993 = vrot.lane.b32.xlu0 %v2407_v33, %s2175_s27 }
 0x806   :  { %1003 = vrot.lane.b32.xlu2 %v984_v31, %s2177_s29 }
 0x80b   :  { %1001 = vrot.lane.b32.xlu1 %v2407_v33, %s2174_s2 }
 0x813   :  { %1029 = vrot.lane.b32.xlu1 %v2407_v33, %s2177_s29 }
 0x850   :  { %v991_v34 = vpop.permute.xlu2 %990 }
 0x851   :  { %1055 = vrot.lane.b32.xlu0 %v991_v34, %s2177_s29  ;;  %v1954_v36 = vpack.i.bf16 %v991_v34, %v984_v31 }
 0x858   :  { %v2419_v35 = vpop.permute.xlu2 %995 }
 0x859   :  { %1107 = vrot.lane.b32.xlu1 %v2419_v35, %s2177_s29  ;;  %v1959_v8 = vpack.i.bf16 %v2419_v35, %v2407_v33 }
 0x860   :  { %v1004_v37 = vpop.permute.xlu2 %1003 }
 0x861   :  { %1955 = vrot.lane.b32.xlu1 %v1954_v36, %s2178_s30  ;;  %1891 = vmatpush.xpose.msk.msrb.mxu2 %vm120_vm1, %v1004_v37 }
 0x864   :  { %1892 = vmatmul.msk.f32.vlgmr.msrb.gmra.mxu2 %vm120_vm1, %v984_v31 }
 0x868   :  { %v2426_v38 = vpop.permute.xlu0 %999 }
 0x869   :  { %1159 = vrot.lane.b32.xlu0 %v2426_v38, %s2177_s29 }
 0x875   :  { %v2430_v6 = vpop.permute.xlu1 %997  ;;  %v2434_v39 = vpop.permute.xlu0 %993 }
 0x876   :  { %1133 = vrot.lane.b32.xlu2 %v2430_v6, %s2177_s29 }
 0x87d   :  { %v2436_v40 = vpop.permute.xlu1 %1001 }
 0x87e   :  { %1081 = vrot.lane.b32.xlu2 %v2434_v39, %s2177_s29  ;;  %1185 = vrot.lane.b32.xlu0 %v2436_v40, %s2177_s29 }
 0x885   :  { %v1030_v41 = vpop.permute.xlu1 %1029 }
 0x886   :  { %1893 = vmatpush.xpose.msk.msra.mxu2 %vm120_vm1, %v1030_v41 }
 0x889   :  { %1894 = vmatmul.msk.f32.vlgmr.msra.gmra.mxu2 %vm120_vm1, %v2407_v33 }
 0x8c3   :  { %v1056_v42 = vpop.permute.xlu0 %1055 }
 0x8c4   :  { %1895 = vmatpush.xpose.msk.msrb.mxu3 %vm120_vm1, %v1056_v42 }
 0x8c7   :  { %1896 = vmatmul.msk.f32.vlgmr.msrb.gmra.mxu3 %vm120_vm1, %v991_v34 }
 0x8cb   :  { %v1108_v21 = vpop.permute.xlu1 %1107 }
 0x8cc   :  { %1899 = vmatpush.xpose.msk.msra.mxu1 %vm120_vm1, %v1108_v21 }
 0x8cf   :  { %1900 = vmatmul.msk.f32.vlgmr.msra.gmra.mxu1 %vm120_vm1, %v2419_v35 }
 0x8d0   :  { %v1134_v43 = vpop.permute.xlu2 %1133 }
 0x8d1   :  { %1901 = vmatpush.xpose.msk.msrb.mxu2 %vm120_vm1, %v1134_v43 }
 0x8d3   :  { %v1956_v44 = vpop.permute.xlu1 %1955 }
 0x8d4   :  { %v1957_v46 = vunpack.i.l.bf16 %v1956_v44  ;;  %1902 = vmatmul.msk.f32.vlgmr.msrb.gmra.mxu2 %vm120_vm1, %v2430_v6  ;;  %v1958_v48 = vunpack.i.h.bf16 %v1956_v44 }
 0x8d6   :  { %1320 = vmatpush.msrb.mxu1 %v1957_v46 }
 0x8d8   :  { %v1082_v47 = vpop.permute.xlu2 %1081 }
 0x8d9   :  { %1897 = vmatpush.xpose.msk.msra.mxu0 %vm120_vm1, %v1082_v47 }
 0x8db   :  { %v1160_v49 = vpop.permute.xlu0 %1159 }
 0x8dc   :  { %1898 = vmatmul.msk.f32.vlgmr.msra.gmra.mxu0 %vm120_vm1, %v2434_v39  ;;  %1903 = vmatpush.xpose.msk.msra.mxu3 %vm120_vm1, %v1160_v49 }
 0x8df   :  { %1904 = vmatmul.msk.f32.vlgmr.msra.gmra.mxu3 %vm120_vm1, %v2426_v38 }
 0x8e0   :  { %1372 = vmatpush.msrb.mxu3 %v1958_v48 }
 0x8e7   :  { %v1026_v9 = vpop.f32.mrf.mxu2 }
 0x8e8   :  { %v1211_v50 = vsel %vm120_vm1, %v1026_v9, -inf }
 0x8e9   :  { %1212 = vmax.xlane.f32.xlu1 %v1211_v50 }
 0x8f0   :  { %v1186_v51 = vpop.permute.xlu0 %1185 }
 0x8f1   :  { %1905 = vmatpush.xpose.msk.msrb.mxu0 %vm120_vm1, %v1186_v51 }
 0x8f4   :  { %1906 = vmatmul.msk.f32.vlgmr.msrb.gmra.mxu0 %vm120_vm1, %v2436_v40 }
 0x90c   :  { %v1052_v52 = vpop.f32.mrf.mxu2 }
 0x90d   :  { %v1214_v53 = vsel %vm120_vm1, %v1052_v52, -inf }
 0x90e   :  { %1215 = vmax.xlane.f32.xlu0 %v1214_v53 }
 0x94a   :  { %v1078_v54 = vpop.f32.mrf.mxu3 }
 0x94b   :  { %v1217_v55 = vsel %vm120_vm1, %v1078_v54, -inf }
 0x94c   :  { %1218 = vmax.xlane.f32.xlu2 %v1217_v55  ;;  %v1130_v56 = vpop.f32.mrf.mxu1 }
 0x94d   :  { %v1223_v57 = vsel %vm120_vm1, %v1130_v56, -inf }
 0x94e   :  { %1224 = vmax.xlane.f32.xlu1 %v1223_v57 }
 0x957   :  { %v1156_v58 = vpop.f32.mrf.mxu2 }
 0x958   :  { %v1226_v59 = vsel %vm120_vm1, %v1156_v58, -inf }
 0x959   :  { %1227 = vmax.xlane.f32.xlu2 %v1226_v59  ;;  %v1104_v60 = vpop.f32.mrf.mxu0 }
 0x95a   :  { %v1220_v61 = vsel %vm120_vm1, %v1104_v60, -inf }
 0x95b   :  { %1221 = vmax.xlane.f32.xlu1 %v1220_v61 }
 0x95c   :  { %v1213_v62 = vpop.xlane.xlu1 %1212 }
 0x95d   :  { %v1235_v63 = vsub.f32 %v1026_v9, %v1213_v62 }
 0x95f   :  { %v1243_v0 = vmul.f32 1.442695, %v1235_v63 }
 0x961   :  { %2027 = vpow2.f32 %v1243_v0 }
 0x962   :  { %v1182_v1 = vpop.f32.mrf.mxu3 }
 0x963   :  { %v1229_v2 = vsel %vm120_vm1, %v1182_v1, -inf }
 0x964   :  { %1230 = vmax.xlane.f32.xlu0 %v1229_v2 }
 0x967   :  { %v2028_v3 = vpop.eup %2027 }
 0x968   :  { %v1259_v4 = vsel %vm120_vm1, %v2028_v3, 0.0 }
 0x96c   :  { %1260 = vadd.xlane.f32.xlu0 %v1259_v4 }
 0x971   :  { %v2470_v5 = vpop.f32.mrf.mxu0 }
 0x972   :  { %v1232_v7 = vsel %vm120_vm1, %v2470_v5, -inf }
 0x973   :  { %1233 = vmax.xlane.f32.xlu2 %v1232_v7 }
 0x981   :  { %v1216_v10 = vpop.xlane.xlu0 %1215 }
 0x982   :  { %v1236_v11 = vsub.f32 %v1052_v52, %v1216_v10  ;;  %v1964_v52 = vpack.i.bf16 %v2426_v38, %v2430_v6  ;;  %v1507_v6 = vld [vmem:[#allocation7 + $0xc8] sm:$0xff] }
 0x984   :  { %v1245_v13 = vmul.f32 1.442695, %v1236_v11 }
 0x986   :  { %2029 = vpow2.f32 %v1245_v13 }
 0x98b   :  { %1960 = vrot.lane.b32.xlu2 %v1959_v8, %s2178_s30 }
 0x98c   :  { %v2030_v16 = vpop.eup %2029 }
 0x98d   :  { %v1262_v17 = vsel %vm120_vm1, %v2030_v16, 0.0 }
 0x9b4   :  { %1263 = vadd.xlane.f32.xlu2 %v1262_v17 }
 0x9bf   :  { %v1219_v20 = vpop.xlane.xlu2 %1218 }
 0x9c0   :  { %v1237_v22 = vsub.f32 %v1078_v54, %v1219_v20 }
 0x9c1   :  { %v1225_v23 = vpop.xlane.xlu1 %1224 }
 0x9c2   :  { %v1247_v12 = vmul.f32 1.442695, %v1237_v22  ;;  %v1239_v15 = vsub.f32 %v1130_v56, %v1225_v23 }
 0x9c4   :  { %2031 = vpow2.f32 %v1247_v12  ;;  %v1251_v19 = vmul.f32 1.442695, %v1239_v15  ;;  %v1509_v15 = vld [vmem:[#allocation7 + $0xd8] sm:$0xff] }
 0x9c6   :  { %2033 = vpow2.f32 %v1251_v19  ;;  %v1508_v19 = vld [vmem:[#allocation7 + $0xd0] sm:$0xff] }
 0x9ca   :  { %v2032_v24 = vpop.eup %2031 }
 0x9cb   :  { %v1265_v25 = vsel %vm120_vm1, %v2032_v24, 0.0 }
 0x9cc   :  { %v2034_v26 = vpop.eup %2033  ;;  %1266 = vadd.xlane.f32.xlu1 %v1265_v25  ;;  %v1228_v27 = vpop.xlane.xlu2 %1227 }
 0x9cd   :  { %v1240_v28 = vsub.f32 %v1156_v58, %v1228_v27  ;;  %v1271_v29 = vsel %vm120_vm1, %v2034_v26, 0.0  ;;  %v1510_v27 = vld [vmem:[#allocation7 + $0xe0] sm:$0xff] }
 0x9ce   :  { %1272 = vadd.xlane.f32.xlu0 %v1271_v29  ;;  %v1222_v30 = vpop.xlane.xlu1 %1221 }
 0x9cf   :  { %v1253_v31 = vmul.f32 1.442695, %v1240_v28  ;;  %v1238_v32 = vsub.f32 %v1104_v60, %v1222_v30 }
 0x9d1   :  { %2035 = vpow2.f32 %v1253_v31  ;;  %v1249_v33 = vmul.f32 1.442695, %v1238_v32 }
 0x9d3   :  { %2037 = vpow2.f32 %v1249_v33 }
 0x9d7   :  { %v2480_v34 = vpop.eup %2035  ;;  %v1231_v35 = vpop.xlane.xlu0 %1230 }
 0x9d8   :  { %v1241_v36 = vsub.f32 %v1182_v1, %v1231_v35  ;;  %v1274_v37 = vsel %vm120_vm1, %v2480_v34, 0.0 }
 0x9d9   :  { %v2038_v41 = vpop.eup %2037  ;;  %1275 = vadd.xlane.f32.xlu2 %v1274_v37 }
 0x9da   :  { %v1255_v42 = vmul.f32 1.442695, %v1241_v36  ;;  %v1268_v21 = vsel %vm120_vm1, %v2038_v41, 0.0 }
 0x9db   :  { %1269 = vadd.xlane.f32.xlu0 %v1268_v21 }
 0x9dc   :  { %2039 = vpow2.f32 %v1255_v42 }
 0x9df   :  { %v1261_v43 = vpop.xlane.xlu0 %1260 }
 0x9e0   :  { %2041 = vrcp.f32 %v1261_v43  ;;  %v1978_v43 = vld [vmem:[#allocation7 + $0x149] ss:$0 sm:$0xff] }
 0x9e2   :  { %v2040_v44 = vpop.eup %2039 }
 0x9e3   :  { %v1277_v46 = vsel %vm120_vm1, %v2040_v44, 0.0 }
 0x9e4   :  { %1278 = vadd.xlane.f32.xlu0 %v1277_v46 }
 0x9e5   :  { %1377 = vrot.lane.b32.xlu1 %v2434_v39, %s2178_s30 }
 0x9e6   :  { %v2042_v47 = vpop.eup %2041  ;;  %v1234_v48 = vpop.xlane.xlu2 %1233 }
 0x9e7   :  { %v1291_v49 = vmul.f32 %v2042_v47, %v2028_v3  ;;  %v1242_v39 = vsub.f32 %v2470_v5, %v1234_v48 }
 0x9e9   :  { %1907 = vmatmul.msk.f32.vlgmr.msrb.gmra.mxu1 %vm120_vm1, %v1291_v49  ;;  %v1257_v53 = vmul.f32 1.442695, %v1242_v39 }
 0x9eb   :  { %2043 = vpow2.f32 %v1257_v53 }
 0x9ee   :  { %v1961_v9 = vpop.permute.xlu2 %1960 }
 0x9ef   :  { %v1963_v50 = vunpack.i.h.bf16 %v1961_v9  ;;  %v1962_v51 = vunpack.i.l.bf16 %v1961_v9 }
 0x9f1   :  { %1481 = vrot.lane.b32.xlu2 %v2436_v40, %s2178_s30  ;;  %1346 = vmatpush.msra.mxu2 %v1962_v51  ;;  %v2044_v54 = vpop.eup %2043 }
 0x9f2   :  { %1424 = vmatpush.msra.mxu1 %v1963_v50  ;;  %v1280_v55 = vsel %vm120_vm1, %v2044_v54, 0.0 }
 0x9f4   :  { %1533 = vmatpush.msrb.mxu1 %v1507_v6 }
 0x9f8   :  { %1965 = vrot.lane.b32.xlu0 %v1964_v52, %s2178_s30 }
 0xa0f   :  { %1281 = vadd.xlane.f32.xlu1 %v1280_v55 }
 0xa27   :  { %v1264_v56 = vpop.xlane.xlu2 %1263 }
 0xa28   :  { %2045 = vrcp.f32 %v1264_v56 }
 0xa2e   :  { %v2046_v57 = vpop.eup %2045 }
 0xa2f   :  { %v1292_v58 = vmul.f32 %v2046_v57, %v2030_v16 }
 0xa31   :  { %1908 = vmatmul.msk.f32.vlgmr.msra.gmra.mxu2 %vm120_vm1, %v1292_v58 }
 0xa3f   :  { %v1267_v40 = vpop.xlane.xlu1 %1266 }
 0xa40   :  { %2047 = vrcp.f32 %v1267_v40 }
 0xa41   :  { %v1273_v59 = vpop.xlane.xlu0 %1272 }
 0xa42   :  { %2049 = vrcp.f32 %v1273_v59 }
 0xa46   :  { %v2048_v38 = vpop.eup %2047 }
 0xa47   :  { %v1293_v60 = vmul.f32 %v2048_v38, %v2032_v24 }
 0xa48   :  { %v2050_v61 = vpop.eup %2049 }
 0xa49   :  { %v1295_v62 = vmul.f32 %v2050_v61, %v2034_v26  ;;  %1909 = vmatmul.msk.f32.vlgmr.msrb.gmra.mxu3 %vm120_vm1, %v1293_v60 }
 0xa4b   :  { %1911 = vmatmul.msk.f32.vlgmr.msra.gmra.mxu1 %vm120_vm1, %v1295_v62 }
 0xa4c   :  { %v1276_v0 = vpop.xlane.xlu2 %1275 }
 0xa4e   :  { %v1270_v63 = vpop.xlane.xlu0 %1269 }
 0xa4f   :  { %2051 = vrcp.f32 %v1270_v63 }
 0xa50   :  { %2053 = vrcp.f32 %v1276_v0 }
 0xa54   :  { %v1482_v4 = vpop.permute.xlu2 %1481 }
 0xa55   :  { %v2052_v1 = vpop.eup %2051 }
 0xa56   :  { %v1294_v2 = vmul.f32 %v2052_v1, %v2038_v41  ;;  %v2054_v8 = vpop.eup %2053 }
 0xa57   :  { %v1378_v3 = vpop.permute.xlu1 %1377  ;;  %v1279_v5 = vpop.xlane.xlu0 %1278  ;;  %v1296_v17 = vmul.f32 %v2054_v8, %v2480_v34 }
 0xa58   :  { %1398 = vmatpush.msra.mxu0 %v1378_v3  ;;  %2055 = vrcp.f32 %v1279_v5  ;;  %v1700_v5 = vld [vmem:[#allocation7 + $0xf0] sm:$0xff] }
 0xa59   :  { %1910 = vmatmul.msk.f32.vlgmr.msra.gmra.mxu0 %vm120_vm1, %v1294_v2 }
 0xa5a   :  { %1502 = vmatpush.msrb.mxu0 %v1482_v4  ;;  %v1701_v4 = vld [vmem:[#allocation7 + $0xf8] sm:$0xff] }
 0xa5c   :  { %1620 = vmatpush.msra.mxu0 %v1510_v27  ;;  %v1709_v27 = vld [vmem:[#allocation7 + $0x130] sm:$0xff] }
 0xa5e   :  { %v2056_v10 = vpop.eup %2055 }
 0xa5f   :  { %v1297_v20 = vmul.f32 %v2056_v10, %v2040_v44 }
 0xa66   :  { %v1322_v7 = vpop.f32.mrf.mxu1 }
 0xa67   :  { %1915 = vmatmul.msk.f32.vlgmr.msrb.gmra.mxu1 %vm120_vm1, %v1322_v7  ;;  %v1699_v7 = vld [vmem:[#allocation7 + $0xe8] sm:$0xff] }
 0xa6a   :  { %v1966_v11 = vpop.permute.xlu0 %1965 }
 0xa6b   :  { %v1968_v13 = vunpack.i.h.bf16 %v1966_v11  ;;  %v1967_v16 = vunpack.i.l.bf16 %v1966_v11 }
 0xa6d   :  { %1450 = vmatpush.msrb.mxu2 %v1967_v16  ;;  %1476 = vmatpush.msra.mxu3 %v1968_v13 }
 0xa6e   :  { %1912 = vmatmul.msk.f32.vlgmr.msrb.gmra.mxu2 %vm120_vm1, %v1296_v17  ;;  %1913 = vmatmul.msk.f32.vlgmr.msra.gmra.mxu3 %vm120_vm1, %v1297_v20 }
 0xa6f   :  { %1591 = vmatpush.msrb.mxu3 %v1509_v15  ;;  %1562 = vmatpush.msra.mxu2 %v1508_v19  ;;  %v1711_v15 = vld [vmem:[#allocation7 + $0x140] sm:$0xff]  ;;  %v1710_v19 = vld [vmem:[#allocation7 + $0x138] sm:$0xff] }
 0xa71   :  { %1760 = vmatpush.msrb.mxu2 %v1711_v15 }
 0xa73   :  { %1761 = vmatpush.msrb.mxu2 %v1710_v19  ;;  %v1984_v19 = vld [vmem:[#allocation7 + $0x14f] ss:$0 sm:$0xff] }
 0xa75   :  { %1762 = vmatpush.msrb.mxu2 %v1709_v27 }
 0xa82   :  { %v1282_v22 = vpop.xlane.xlu1 %1281 }
 0xa83   :  { %2057 = vrcp.f32 %v1282_v22 }
 0xa89   :  { %v2058_v23 = vpop.eup %2057 }
 0xa8a   :  { %v1298_v12 = vmul.f32 %v2058_v23, %v2044_v54  ;;  %v1979_v23 = vld [vmem:[#allocation7 + $0x14a] ss:$0 sm:$0xff] }
 0xa8c   :  { %1914 = vmatmul.msk.f32.vlgmr.msrb.gmra.mxu0 %vm120_vm1, %v1298_v12 }
 0xab4   :  { %v1348_v24 = vpop.f32.mrf.mxu2 }
 0xab5   :  { %1916 = vmatmul.msk.f32.gmra.mxu1 %vm120_vm1, %v1348_v24 }
 0xac8   :  { %v1426_v25 = vpop.f32.mrf.mxu1 }
 0xac9   :  { %1919 = vmatmul.msk.f32.vlgmr.msrb.gmra.mxu3 %vm120_vm1, %v1426_v25 }
 0xacc   :  { %v1374_v26 = vpop.f32.mrf.mxu3 }
 0xacd   :  { %1917 = vmatmul.msk.f32.vlgmr.msra.gmra.mxu2 %vm120_vm1, %v1374_v26  ;;  %v1980_v26 = vld [vmem:[#allocation7 + $0x14b] ss:$0 sm:$0xff] }
 0xad6   :  { %v1400_v28 = vpop.f32.mrf.mxu0 }
 0xad7   :  { %1918 = vmatmul.msk.f32.gmra.mxu2 %vm120_vm1, %v1400_v28 }
 0xae4   :  { %v1535_v33 = vpop.f32.mrf.mxu1 }
 0xae5   :  { %v1628_v35 = vsel %vm74_vm0, %v1535_v33, 0.0 }
 0xaf1   :  { %v1452_v29 = vpop.f32.mrf.mxu2  ;;  %v1478_v30 = vpop.f32.mrf.mxu3 }
 0xaf2   :  { %1920 = vmatmul.msk.f32.gmra.mxu3 %vm120_vm1, %v1452_v29  ;;  %1921 = vmatmul.msk.f32.vlgmr.msra.gmra.mxu0 %vm120_vm1, %v1478_v30 }
 0xb09   :  { %v1504_v31 = vpop.f32.mrf.mxu0 }
 0xb0a   :  { %1922 = vmatmul.msk.f32.gmra.mxu0 %vm120_vm1, %v1504_v31  ;;  %v1708_v31 = vld [vmem:[#allocation7 + $0x128] sm:$0xff] }
 0xb0b   :  { %1763 = vmatpush.msrb.mxu2 %v1708_v31 }
 0xb32   :  { %v1538_v50 = vpop.f32.mrf.mxu1 }
 0xb33   :  { %v1635_v39 = vsel %vm74_vm0, %v1538_v50, 0.0  ;;  %v1981_v50 = vld [vmem:[#allocation7 + $0x14c] ss:$0 sm:$0xff] }
 0xb4c   :  { %v1593_v36 = vpop.f32.mrf.mxu3 }
 0xb4d   :  { %v1631_v41 = vsel %vm74_vm0, %v1593_v36, 0.0 }
 0xb50   :  { %v1564_v32 = vpop.f32.mrf.mxu2 }
 0xb51   :  { %v1629_v34 = vsel %vm74_vm0, %v1564_v32, 0.0 }
 0xb52   :  { %v1630_v37 = vadd.f32 %v1629_v34, %v1628_v35  ;;  %v1707_v34 = vld [vmem:[#allocation7 + $0x120] sm:$0xff] }
 0xb53   :  { %1764 = vmatpush.msrb.mxu2 %v1707_v34 }
 0xb54   :  { %v1632_v21 = vadd.f32 %v1631_v41, %v1630_v37 }
 0xb5a   :  { %v1567_v9 = vpop.f32.mrf.mxu2 }
 0xb5b   :  { %v1636_v52 = vsel %vm74_vm0, %v1567_v9, 0.0  ;;  %v1704_v9 = vld [vmem:[#allocation7 + $0x108] sm:$0xff] }
 0xb5c   :  { %v1637_v54 = vadd.f32 %v1636_v52, %v1635_v39 }
 0xb6f   :  { %v1622_v42 = vpop.f32.mrf.mxu0 }
 0xb70   :  { %v1633_v44 = vsel %vm74_vm0, %v1622_v42, 0.0 }
 0xb71   :  { %v1634_v46 = vadd.f32 %v1633_v44, %v1632_v21 }
 0xb73   :  { %v1643_v47 = vadd.f32 %v1978_v43, %v1634_v46 }
 0xb75   :  { %v1647_v48 = vadd.f32 %v1643_v47, %v2396_v18  ;;  %v1596_v51 = vpop.f32.mrf.mxu3 }
 0xb76   :  { %v1638_v53 = vsel %vm74_vm0, %v1596_v51, 0.0 }
 0xb77   :  { %v1649_v49 = vsel %vm74_vm0, %v1647_v48, 0.0  ;;  %v1639_v55 = vadd.f32 %v1638_v53, %v1637_v54 }
 0xb78   :  { %1650 = vadd.xlane.f32.xlu0 %v1649_v49  ;;  %v1705_v49 = vld [vmem:[#allocation7 + $0x110] sm:$0xff] }
 0xb87   :  { %v1625_v56 = vpop.f32.mrf.mxu0 }
 0xb88   :  { %v1640_v57 = vsel %vm74_vm0, %v1625_v56, 0.0  ;;  %v1982_v56 = vld [vmem:[#allocation7 + $0x14d] ss:$0 sm:$0xff] }
 0xb89   :  { %v1641_v58 = vadd.f32 %v1640_v57, %v1639_v55 }
 0xb8b   :  { %v1644_v40 = vadd.f32 %v1978_v43, %v1641_v58 }
 0xb8d   :  { %v1648_v18 = vadd.f32 %v1644_v40, %v2400_v14  ;;  %v1702_v14 = vld [vmem:[#allocation7 + $0x100] sm:$0xff] }
 0xb8e   :  { %1732 = vmatpush.msra.mxu1 %v1702_v14 }
 0xb8f   :  { %v1652_v59 = vsel %vm74_vm0, %v1648_v18, 0.0 }
 0xb90   :  { %1653 = vadd.xlane.f32.xlu2 %v1652_v59  ;;  %1733 = vmatpush.msra.mxu1 %v1701_v4 }
 0xb92   :  { %1734 = vmatpush.msra.mxu1 %v1700_v5 }
 0xb94   :  { %1735 = vmatpush.msra.mxu1 %v1699_v7 }
 0xbeb   :  { %v1651_v38 = vpop.xlane.xlu0 %1650 }
 0xbec   :  { %v1655_v6 = vmul.f32 %v1651_v38, %v2376_v45 }
 0xbee   :  { %v1657_v60 = vsub.f32 %v1647_v48, %v1655_v6  ;;  %v1706_v48 = vld [vmem:[#allocation7 + $0x118] sm:$0xff] }
 0xbef   :  { %1765 = vmatpush.msrb.mxu2 %v1706_v48 }
 0xbf0   :  { %v1659_v61 = vmul.f32 %v1657_v60, %v1657_v60 }
 0xbf1   :  { %1766 = vmatpush.msrb.mxu2 %v1705_v49 }
 0xbf2   :  { %v1661_v62 = vsel %vm74_vm0, %v1659_v61, 0.0 }
 0xbf3   :  { %1662 = vadd.xlane.f32.xlu1 %v1661_v62  ;;  %1767 = vmatpush.msrb.mxu2 %v1704_v9 }
 0xc03   :  { %v1654_v63 = vpop.xlane.xlu2 %1653 }
 0xc04   :  { %v1656_v0 = vmul.f32 %v1654_v63, %v2376_v45 }
 0xc06   :  { %v1658_v1 = vsub.f32 %v1648_v18, %v1656_v0 }
 0xc08   :  { %v1660_v2 = vmul.f32 %v1658_v1, %v1658_v1 }
 0xc0a   :  { %v1664_v3 = vsel %vm74_vm0, %v1660_v2, 0.0 }
 0xc0b   :  { %1665 = vadd.xlane.f32.xlu1 %v1664_v3 }
 0xc66   :  { %v1663_v8 = vpop.xlane.xlu1 %1662 }
 0xc67   :  { %v1667_v10 = vmul.f32 %v1663_v8, %v2376_v45 }
 0xc69   :  { %v1669_v11 = vadd.f32 1e-05, %v1667_v10 }
 0xc6b   :  { %2059 = vrsqrt.f32 %v1669_v11  ;;  %vm1677_vm2 = vweird.f32 %v1669_v11 }
 0xc71   :  { %v2060_v13 = vpop.eup %2059 }
 0xc72   :  { %v1672_v16 = vmul.f32 %v2060_v13, %v1669_v11  ;;  %vm1678_vm1 = vweird.f32 %v2060_v13 }
 0xc73   :  { %vm1679_vm3 = vmor %vm1677_vm2, %vm1678_vm1 }
 0xc74   :  { %v1673_v17 = vmul.f32 %v2060_v13, %v1672_v16 }
 0xc76   :  { %v1674_v20 = vmul.f32 0.5, %v1673_v17 }
 0xc78   :  { %v1675_v22 = vsub.f32 1.5, %v1674_v20 }
 0xc7a   :  { %v1676_v12 = vmul.f32 %v2060_v13, %v1675_v22 }
 0xc7c   :  { %v1680_v24 = vsel %vm1679_vm3, %v2060_v13, %v1676_v12 }
 0xc7d   :  { %v1691_v25 = vmul.f32 %v1680_v24, %v1657_v60 }
 0xc7e   :  { %v1666_v28 = vpop.xlane.xlu1 %1665 }
 0xc7f   :  { %v1694_v29 = vmul.f32 %v1979_v23, %v1691_v25  ;;  %v1668_v30 = vmul.f32 %v1666_v28, %v2376_v45 }
 0xc81   :  { %v1670_v32 = vadd.f32 1e-05, %v1668_v30  ;;  %v1697_v33 = vadd.f32 %v1980_v26, %v1694_v29 }
 0xc83   :  { %2061 = vrsqrt.f32 %v1670_v32  ;;  %1923 = vmatmul.msk.f32.vlgmr.msra.gmra.mxu1 %vm74_vm0, %v1697_v33  ;;  %vm1687_vm5 = vweird.f32 %v1670_v32 }
 0xc89   :  { %v2062_v35 = vpop.eup %2061 }
 0xc8a   :  { %v1682_v36 = vmul.f32 %v2062_v35, %v1670_v32  ;;  %vm1688_vm4 = vweird.f32 %v2062_v35 }
 0xc8b   :  { %vm1689_vm6 = vmor %vm1687_vm5, %vm1688_vm4 }
 0xc8c   :  { %v1683_v37 = vmul.f32 %v2062_v35, %v1682_v36 }
 0xc8e   :  { %v1684_v41 = vmul.f32 0.5, %v1683_v37 }
 0xc90   :  { %v1685_v42 = vsub.f32 1.5, %v1684_v41 }
 0xc92   :  { %v1686_v21 = vmul.f32 %v2062_v35, %v1685_v42 }
 0xc94   :  { %v1690_v43 = vsel %vm1689_vm6, %v2062_v35, %v1686_v21 }
 0xc95   :  { %v1692_v44 = vmul.f32 %v1690_v43, %v1658_v1 }
 0xc97   :  { %v1695_v46 = vmul.f32 %v1979_v23, %v1692_v44  ;;  %v1983_v23 = vld [vmem:[#allocation7 + $0x14e] ss:$0 sm:$0xff] }
 0xc99   :  { %v1698_v47 = vadd.f32 %v1980_v26, %v1695_v46 }
 0xc9b   :  { %1924 = vmatmul.msk.f32.gmra.mxu1 %vm74_vm0, %v1698_v47 }
 0xd00   :  { %v1737_v51 = vpop.f32.mrf.mxu1 }
 0xd01   :  { %v1738_v52 = vadd.f32 %v1981_v50, %v1737_v51 }
 0xd03   :  { %v1743_v39 = vmax.f32 %v1738_v52, 0.0 }
 0xd05   :  { %1925 = vmatmul.msk.f32.vlgmr.msrb.gmra.mxu2 %vm869_vm9, %v1743_v39 }
 0xd18   :  { %v1740_v53 = vpop.f32.mrf.mxu1 }
 0xd19   :  { %v1741_v54 = vadd.f32 %v1981_v50, %v1740_v53 }
 0xd1b   :  { %v1744_v55 = vmax.f32 %v1741_v54, 0.0 }
 0xd1d   :  { %1926 = vmatmul.msk.f32.gmra.mxu2 %vm869_vm9, %v1744_v55 }
 0xd88   :  { %v1769_v57 = vpop.f32.mrf.mxu2 }
 0xd89   :  { %v1770_v58 = vadd.f32 %v1982_v56, %v1769_v57 }
 0xd8b   :  { %v1777_v40 = vadd.f32 %v1770_v58, %v1697_v33 }
 0xd8d   :  { %v1779_v18 = vsel %vm74_vm0, %v1777_v40, 0.0 }
 0xd8e   :  { %1780 = vadd.xlane.f32.xlu0 %v1779_v18 }
 0xda0   :  { %v1772_v59 = vpop.f32.mrf.mxu2 }
 0xda1   :  { %v1773_v38 = vadd.f32 %v1982_v56, %v1772_v59 }
 0xda3   :  { %v1778_v6 = vadd.f32 %v1773_v38, %v1698_v47 }
 0xda5   :  { %v1782_v60 = vsel %vm74_vm0, %v1778_v6, 0.0 }
 0xda6   :  { %1783 = vadd.xlane.f32.xlu2 %v1782_v60 }
 0xe01   :  { %v1781_v61 = vpop.xlane.xlu0 %1780 }
 0xe02   :  { %v1785_v62 = vmul.f32 %v1781_v61, %v2376_v45 }
 0xe04   :  { %v1787_v63 = vsub.f32 %v1777_v40, %v1785_v62 }
 0xe06   :  { %v1789_v0 = vmul.f32 %v1787_v63, %v1787_v63 }
 0xe08   :  { %v1791_v1 = vsel %vm74_vm0, %v1789_v0, 0.0 }
 0xe09   :  { %1792 = vadd.xlane.f32.xlu1 %v1791_v1 }
 0xe19   :  { %v1784_v2 = vpop.xlane.xlu2 %1783 }
 0xe1a   :  { %v1786_v3 = vmul.f32 %v1784_v2, %v2376_v45 }
 0xe1c   :  { %v1788_v14 = vsub.f32 %v1778_v6, %v1786_v3 }
 0xe1e   :  { %v1790_v4 = vmul.f32 %v1788_v14, %v1788_v14 }
 0xe20   :  { %v1794_v5 = vsel %vm74_vm0, %v1790_v4, 0.0 }
 0xe21   :  { %1795 = vadd.xlane.f32.xlu0 %v1794_v5 }
 0xe7c   :  { %v1793_v7 = vpop.xlane.xlu1 %1792 }
 0xe7d   :  { %v1797_v8 = vmul.f32 %v1793_v7, %v2376_v45 }
 0xe7f   :  { %v1799_v10 = vadd.f32 1e-05, %v1797_v8 }
 0xe81   :  { %2063 = vrsqrt.f32 %v1799_v10  ;;  %vm1807_vm8 = vweird.f32 %v1799_v10 }
 0xe87   :  { %v2064_v11 = vpop.eup %2063 }
 0xe88   :  { %v1802_v13 = vmul.f32 %v2064_v11, %v1799_v10  ;;  %vm1808_vm7 = vweird.f32 %v2064_v11 }
 0xe89   :  { %vm1809_vm9 = vmor %vm1807_vm8, %vm1808_vm7 }
 0xe8a   :  { %v1803_v16 = vmul.f32 %v2064_v11, %v1802_v13 }
 0xe8c   :  { %v1804_v17 = vmul.f32 0.5, %v1803_v16 }
 0xe8e   :  { %v1805_v20 = vsub.f32 1.5, %v1804_v17 }
 0xe90   :  { %v1806_v22 = vmul.f32 %v2064_v11, %v1805_v20 }
 0xe92   :  { %v1810_v12 = vsel %vm1809_vm9, %v2064_v11, %v1806_v22 }
 0xe93   :  { %v1821_v15 = vmul.f32 %v1810_v12, %v1787_v63 }
 0xe94   :  { %v1796_v24 = vpop.xlane.xlu0 %1795 }
 0xe95   :  { %v1824_v25 = vmul.f32 %v1983_v23, %v1821_v15  ;;  %v1798_v26 = vmul.f32 %v1796_v24, %v2376_v45 }
 0xe97   :  { %v1800_v27 = vadd.f32 1e-05, %v1798_v26  ;;  %v1827_v28 = vadd.f32 %v1984_v19, %v1824_v25 }
 0xe99   :  { %2065 = vrsqrt.f32 %v1800_v27  ;;  %1829 = vst.msk [vmem:[#allocation8] sm:$0xff] %vm74_vm0, %v1827_v28  ;;  %vm1817_vm11 = vweird.f32 %v1800_v27 }
 0xe9f   :  { %v2066_v29 = vpop.eup %2065 }
 0xea0   :  { %v1812_v30 = vmul.f32 %v2066_v29, %v1800_v27  ;;  %vm1818_vm10 = vweird.f32 %v2066_v29 }
 0xea1   :  { %vm1819_vm12 = vmor %vm1817_vm11, %vm1818_vm10 }
 0xea2   :  { %v1813_v31 = vmul.f32 %v2066_v29, %v1812_v30 }
 0xea4   :  { %v1814_v32 = vmul.f32 0.5, %v1813_v31 }
 0xea6   :  { %v1815_v33 = vsub.f32 1.5, %v1814_v32 }
 0xea8   :  { %v1816_v34 = vmul.f32 %v2066_v29, %v1815_v33 }
 0xeaa   :  { %v1820_v35 = vsel %vm1819_vm12, %v2066_v29, %v1816_v34 }
 0xeab   :  { %v1822_v36 = vmul.f32 %v1820_v35, %v1788_v14 }
 0xead   :  { %v1825_v45 = vmul.f32 %v1983_v23, %v1822_v36 }
 0xeaf   :  { %v1828_v37 = vadd.f32 %v1984_v19, %v1825_v45 }
 0xeb1   :  { %1830 = vst.msk [vmem:[#allocation8 + $0x8] sm:$0xff] %vm74_vm0, %v1828_v37 }
 0xeb2   :  { %1843 = dma.vmem_to_hbm [thread:$0]  %s1836_s5, 256, %s1838_s8, [#allocation4], %s2170_s20, %s2170_s20, %s2171_s21  }
 0xeb3   :  { %2167 = dma.done.wait [#allocation4], 256  }
 0xeb4   :  { %2168 = vsyncadd [#allocation4], 4294967040 }
 0xeb5   :  { %1848 = vsyncpa [#allocation3], 1 }
 0xeb6   :  { %1849 = vsyncpa [#allocation6], 1 }
 0xeb7   :  { %1850 = vsyncpa [#allocation4], 1 }

</bundles_post_ra>
